<compile_context>
chip_gen: v7x
topology: tpu7x:2x2x1
jax: 0.10.0
libtpu: 0.0.40
codegen_flags: <defaults>
</compile_context>

<pallas_src>
import functools

import jax
import jax.numpy as jnp
from jax.experimental import pallas as pl
from jax.experimental.pallas import tpu as pltpu


# ---------------------------------------------------------------------------
# Helpers
# ---------------------------------------------------------------------------
def _pick_row_tile(m, target=512):
    """Largest multiple of 8 that divides m and is <= target; else m (full block)."""
    if m <= target:
        return m
    for t in range(target - target % 8, 7, -8):
        if m % t == 0:
            return t
    return m


# ---------------------------------------------------------------------------
# Pallas kernels
# ---------------------------------------------------------------------------
def _matmul_bias_kernel(x_ref, w_ref, b_ref, o_ref, *, relu):
    """o = x @ w + b (optional ReLU). x is one M-tile; w/b stay resident."""
    acc = jnp.dot(x_ref[...], w_ref[...], preferred_element_type=jnp.float32)
    acc = acc + b_ref[...]                       # (1, N) broadcasts over rows
    if relu:
        acc = jnp.maximum(acc, 0.0)
    o_ref[...] = acc.astype(o_ref.dtype)


def _max4_kernel(a_ref, b_ref, c_ref, d_ref, o_ref):
    """Elementwise max of the 4 pooling candidates (pure VPU, full vregs)."""
    o_ref[...] = jnp.maximum(jnp.maximum(a_ref[...], b_ref[...]),
                             jnp.maximum(c_ref[...], d_ref[...]))


def _fc_tail_kernel(x_ref, w1_ref, b1_ref, w2_ref, b2_ref, o_ref):
    """logits = relu(x @ w1 + b1) @ w2 + b2, hidden kept on-chip."""
    h = jnp.dot(x_ref[...], w1_ref[...], preferred_element_type=jnp.float32)
    h = jnp.maximum(h + b1_ref[...], 0.0)
    out = jnp.dot(h, w2_ref[...], preferred_element_type=jnp.float32) + b2_ref[...]
    o_ref[...] = out.astype(o_ref.dtype)


# ---------------------------------------------------------------------------
# pallas_call wrappers
# ---------------------------------------------------------------------------
def matmul_bias(x, w, b, *, relu=False, row_tile=512):
    """x: [M, K] @ w: [K, N] + b: [N] -> [M, N], tiled & pipelined over M."""
    M, K = x.shape
    K2, N = w.shape
    assert K == K2 and b.shape == (N,)
    tm = _pick_row_tile(M, row_tile)
    return pl.pallas_call(
        functools.partial(_matmul_bias_kernel, relu=relu),
        out_shape=jax.ShapeDtypeStruct((M, N), jnp.float32),
        grid=(M // tm,),
        in_specs=[
            pl.BlockSpec((tm, K), lambda i: (i, 0)),
            pl.BlockSpec((K, N), lambda i: (0, 0)),   # weight resident
            pl.BlockSpec((1, N), lambda i: (0, 0)),   # bias resident
        ],
        out_specs=pl.BlockSpec((tm, N), lambda i: (i, 0)),
        compiler_params=pltpu.CompilerParams(dimension_semantics=("parallel",)),
    )(x, w, b.reshape(1, N))


def maxpool2x2_nhwc(x):
    """2x2 / stride-2 max pool on an NHWC tensor (C on the lane axis)."""
    B, H, W, C = x.shape
    OH, OW = H // 2, W // 2
    M = B * OH * OW
    # Glue: gather the 4 window candidates (data movement only).
    a = x[:, 0::2, 0::2, :].reshape(M, C)
    b = x[:, 0::2, 1::2, :].reshape(M, C)
    c = x[:, 1::2, 0::2, :].reshape(M, C)
    d = x[:, 1::2, 1::2, :].reshape(M, C)
    tm = _pick_row_tile(M, 1024)
    out = pl.pallas_call(
        _max4_kernel,
        out_shape=jax.ShapeDtypeStruct((M, C), jnp.float32),
        grid=(M // tm,),
        in_specs=[pl.BlockSpec((tm, C), lambda i: (i, 0))] * 4,
        out_specs=pl.BlockSpec((tm, C), lambda i: (i, 0)),
        compiler_params=pltpu.CompilerParams(dimension_semantics=("parallel",)),
    )(a, b, c, d)
    return out.reshape(B, OH, OW, C)


def fc_tail(x, w1, b1, w2, b2, *, row_tile=512):
    """Fused flatten-classifier: relu(x @ w1 + b1) @ w2 + b2 in one kernel."""
    M, K = x.shape
    _, Hn = w1.shape
    _, N = w2.shape
    tm = _pick_row_tile(M, row_tile)
    return pl.pallas_call(
        _fc_tail_kernel,
        out_shape=jax.ShapeDtypeStruct((M, N), jnp.float32),
        grid=(M // tm,),
        in_specs=[
            pl.BlockSpec((tm, K), lambda i: (i, 0)),
            pl.BlockSpec((K, Hn), lambda i: (0, 0)),
            pl.BlockSpec((1, Hn), lambda i: (0, 0)),
            pl.BlockSpec((Hn, N), lambda i: (0, 0)),
            pl.BlockSpec((1, N), lambda i: (0, 0)),
        ],
        out_specs=pl.BlockSpec((tm, N), lambda i: (i, 0)),
        compiler_params=pltpu.CompilerParams(dimension_semantics=("parallel",)),
    )(x, w1, b1.reshape(1, Hn), w2, b2.reshape(1, N))


# ---------------------------------------------------------------------------
# Glue: NHWC im2col patch extraction (data movement only, no compute)
# ---------------------------------------------------------------------------
def im2col_nhwc(x, k):
    """x: [B, H, W, C] -> patches [B*OH*OW, k*k*C] with (kh, kw, c) column order."""
    B, H, W, C = x.shape
    OH, OW = H - k + 1, W - k + 1
    cols = [x[:, kh:kh + OH, kw:kw + OW, :] for kh in range(k) for kw in range(k)]
    p = jnp.concatenate(cols, axis=-1)              # [B, OH, OW, k*k*C]
    return p.reshape(B * OH * OW, k * k * C), OH, OW


# ---------------------------------------------------------------------------
# Parameter init (PyTorch-default-style uniform bounds, then kernel layout)
# ---------------------------------------------------------------------------
def init_params(key):
    def uniform(key, shape, fan_in):
        bound = 1.0 / jnp.sqrt(jnp.float32(fan_in))
        return jax.random.uniform(key, shape, jnp.float32, -bound, bound)

    def pad_cols(w, n):
        return jnp.pad(w, ((0, 0), (0, n - w.shape[1])))

    def pad_vec(b, n):
        return jnp.pad(b, (0, n - b.shape[0]))

    ks = jax.random.split(key, 8)

    # PyTorch-shaped weights.
    w1 = uniform(ks[0], (16, 3, 5, 5), 3 * 25)     # Conv2d(3, 16, 5)
    b1 = uniform(ks[1], (16,), 3 * 25)
    w2 = uniform(ks[2], (32, 16, 5, 5), 16 * 25)   # Conv2d(16, 32, 5)
    b2 = uniform(ks[3], (32,), 16 * 25)
    fw1 = uniform(ks[4], (32, 800), 800)           # Linear(800, 32); cols in (c,h,w) order
    fb1 = uniform(ks[5], (32,), 800)
    fw2 = uniform(ks[6], (10, 32), 32)             # Linear(32, 10)
    fb2 = uniform(ks[7], (10,), 32)

    # Kernel layout: conv weights as rows (kh, kw, c) x cols (out), out padded
    # to 128 lanes so the matmul store is lane-dense.
    w1_m = pad_cols(w1.transpose(2, 3, 1, 0).reshape(75, 16), 128)
    w2_m = pad_cols(w2.transpose(2, 3, 1, 0).reshape(400, 32), 128)
    # fc1 rows reordered from PyTorch's (c, h, w) flatten to our NHWC (h, w, c).
    fw1_m = fw1.reshape(32, 32, 5, 5).transpose(0, 2, 3, 1).reshape(32, 800).T
    return {
        "w1": w1_m, "b1": pad_vec(b1, 128),
        "w2": w2_m, "b2": pad_vec(b2, 128),
        "fw1": fw1_m, "fb1": fb1,
        "fw2": fw2.T, "fb2": fb2,
    }


# ---------------------------------------------------------------------------
# Forward pass (matches Lenet5.forward semantics)
# ---------------------------------------------------------------------------
@jax.jit
def lenet5_forward(x, params):
    B = x.shape[0]
    x = jnp.transpose(x, (0, 2, 3, 1))                   # NCHW -> NHWC, once

    # conv1: 3 -> 16 (stored padded to 128), k=5 => [B, 28, 28, 128]
    p, oh, ow = im2col_nhwc(x, 5)                        # [B*784, 75]
    y = matmul_bias(p, params["w1"], params["b1"])       # [B*784, 128]
    y = y.reshape(B, oh, ow, 128)
    y = maxpool2x2_nhwc(y)[:, :, :, :16]                 # pool -> [B, 14, 14, 16]

    # conv2: 16 -> 32 (padded to 128), k=5 => [B, 10, 10, 128]
    p, oh, ow = im2col_nhwc(y, 5)                        # [B*100, 400]
    y = matmul_bias(p, params["w2"], params["b2"])       # [B*100, 128]
    y = y.reshape(B, oh, ow, 128)
    y = maxpool2x2_nhwc(y)[:, :, :, :32]                 # pool -> [B, 5, 5, 32]

    # Flatten in (h, w, c) order; fc1 weight rows were permuted to match,
    # so this is equivalent to PyTorch's x.view(batchsz, -1) on NCHW.
    flat = y.reshape(B, 5 * 5 * 32)

    # Fused fc1 (+ReLU) -> fc2, hidden kept in VMEM/vregs.
    logits = fc_tail(flat, params["fw1"], params["fb1"],
                     params["fw2"], params["fb2"])       # [B, 10]
    return logits


if __name__ == "__main__":
    key = jax.random.PRNGKey(0)
    k_x, k_p = jax.random.split(key)
    x = jax.random.normal(k_x, (2, 3, 32, 32), dtype=jnp.float32)
    params = init_params(k_p)

    logits = lenet5_forward(x, params)
    jax.block_until_ready(logits)
    assert logits.shape == (2, 10) and logits.dtype == jnp.float32
    print("KERNEL_OK")
</pallas_src>

<mosaic_0001>
module attributes {stable_mosaic.version = 11 : i64} {
  func.func @_matmul_bias_kernel(%arg0: i32, %arg1: memref<392x75xf32, #tpu.memory_space<vmem>>, %arg2: memref<75x128xf32, #tpu.memory_space<vmem>>, %arg3: memref<1x128xf32, #tpu.memory_space<vmem>>, %arg4: memref<392x128xf32, #tpu.memory_space<vmem>>) attributes {dimension_semantics = [#tpu.dimension_semantics<parallel>], iteration_bounds = array<i64: 4>, scalar_prefetch = 0 : i64, scratch_operands = 0 : i64, tpu.core_type = #tpu.core_type<tc>, window_params = [{transform_indices = @transform_0, window_bounds = array<i64: 392, 75>}, {pipeline_mode = #tpu.pipeline_mode<synchronous>, transform_indices = @transform_1, window_bounds = array<i64: 75, 128>}, {pipeline_mode = #tpu.pipeline_mode<synchronous>, transform_indices = @transform_2, window_bounds = array<i64: 1, 128>}, {transform_indices = @transform_3, window_bounds = array<i64: 392, 128>}]} {
    %c0 = arith.constant 0 : index
    %c0_0 = arith.constant 0 : index
    %0 = vector.load %arg1[%c0, %c0_0] : memref<392x75xf32, #tpu.memory_space<vmem>>, vector<392x75xf32>
    %c0_1 = arith.constant 0 : index
    %c0_2 = arith.constant 0 : index
    %1 = vector.load %arg2[%c0_1, %c0_2] : memref<75x128xf32, #tpu.memory_space<vmem>>, vector<75x128xf32>
    %cst = arith.constant dense<0.000000e+00> : vector<392x128xf32>
    %2 = tpu.matmul %0, %1, %cst {dimension_numbers = #tpu.dot_dimension_numbers<[1], [0], [0], [1], [0, 0, 1, 1], [], []>} : vector<392x75xf32>, vector<75x128xf32>, vector<392x128xf32> -> vector<392x128xf32>
    %c0_3 = arith.constant 0 : index
    %c0_4 = arith.constant 0 : index
    %3 = vector.load %arg3[%c0_3, %c0_4] : memref<1x128xf32, #tpu.memory_space<vmem>>, vector<1x128xf32>
    %4 = vector.broadcast %3 : vector<1x128xf32> to vector<392x128xf32>
    %5 = arith.addf %2, %4 : vector<392x128xf32>
    %c0_5 = arith.constant 0 : index
    %c0_6 = arith.constant 0 : index
    %6 = vector.load %arg4[%c0_5, %c0_6] : memref<392x128xf32, #tpu.memory_space<vmem>>, vector<392x128xf32>
    tpu.vector_store %arg4[%c0_5, %c0_6], %5 {strides = array<i32>} : memref<392x128xf32, #tpu.memory_space<vmem>>, vector<392x128xf32>,
    return
  }
  func.func @transform_0(%arg0: i32) -> (i32, i32) {
    %c0_i32 = arith.constant 0 : i32
    %c0_i32_0 = arith.constant 0 : i32
    return %arg0, %c0_i32 : i32, i32
  }
  func.func @transform_1(%arg0: i32) -> (i32, i32) {
    %c0_i32 = arith.constant 0 : i32
    %c0_i32_0 = arith.constant 0 : i32
    %c0_i32_1 = arith.constant 0 : i32
    return %c0_i32, %c0_i32_0 : i32, i32
  }
  func.func @transform_2(%arg0: i32) -> (i32, i32) {
    %c0_i32 = arith.constant 0 : i32
    %c0_i32_0 = arith.constant 0 : i32
    %c0_i32_1 = arith.constant 0 : i32
    return %c0_i32, %c0_i32_0 : i32, i32
  }
  func.func @transform_3(%arg0: i32) -> (i32, i32) {
    %c0_i32 = arith.constant 0 : i32
    %c0_i32_0 = arith.constant 0 : i32
    return %arg0, %c0_i32 : i32, i32
  }
}

module attributes {stable_mosaic.version = 11 : i64} {
  func.func @_max4_kernel(%arg0: i32, %arg1: memref<392x128xf32, #tpu.memory_space<vmem>>, %arg2: memref<392x128xf32, #tpu.memory_space<vmem>>, %arg3: memref<392x128xf32, #tpu.memory_space<vmem>>, %arg4: memref<392x128xf32, #tpu.memory_space<vmem>>, %arg5: memref<392x128xf32, #tpu.memory_space<vmem>>) attributes {dimension_semantics = [#tpu.dimension_semantics<parallel>], iteration_bounds = array<i64: 1>, scalar_prefetch = 0 : i64, scratch_operands = 0 : i64, tpu.core_type = #tpu.core_type<tc>, window_params = [{transform_indices = @transform_0, window_bounds = array<i64: 392, 128>}, {transform_indices = @transform_1, window_bounds = array<i64: 392, 128>}, {transform_indices = @transform_2, window_bounds = array<i64: 392, 128>}, {transform_indices = @transform_3, window_bounds = array<i64: 392, 128>}, {transform_indices = @transform_4, window_bounds = array<i64: 392, 128>}]} {
    %c0 = arith.constant 0 : index
    %c0_0 = arith.constant 0 : index
    %0 = vector.load %arg1[%c0, %c0_0] : memref<392x128xf32, #tpu.memory_space<vmem>>, vector<392x128xf32>
    %c0_1 = arith.constant 0 : index
    %c0_2 = arith.constant 0 : index
    %1 = vector.load %arg2[%c0_1, %c0_2] : memref<392x128xf32, #tpu.memory_space<vmem>>, vector<392x128xf32>
    %2 = arith.maximumf %0, %1 : vector<392x128xf32>
    %c0_3 = arith.constant 0 : index
    %c0_4 = arith.constant 0 : index
    %3 = vector.load %arg3[%c0_3, %c0_4] : memref<392x128xf32, #tpu.memory_space<vmem>>, vector<392x128xf32>
    %c0_5 = arith.constant 0 : index
    %c0_6 = arith.constant 0 : index
    %4 = vector.load %arg4[%c0_5, %c0_6] : memref<392x128xf32, #tpu.memory_space<vmem>>, vector<392x128xf32>
    %5 = arith.maximumf %3, %4 : vector<392x128xf32>
    %6 = arith.maximumf %2, %5 : vector<392x128xf32>
    %c0_7 = arith.constant 0 : index
    %c0_8 = arith.constant 0 : index
    %7 = vector.load %arg5[%c0_7, %c0_8] : memref<392x128xf32, #tpu.memory_space<vmem>>, vector<392x128xf32>
    tpu.vector_store %arg5[%c0_7, %c0_8], %6 {strides = array<i32>} : memref<392x128xf32, #tpu.memory_space<vmem>>, vector<392x128xf32>,
    return
  }
  func.func @transform_0(%arg0: i32) -> (i32, i32) {
    %c0_i32 = arith.constant 0 : i32
    %c0_i32_0 = arith.constant 0 : i32
    return %arg0, %c0_i32 : i32, i32
  }
  func.func @transform_1(%arg0: i32) -> (i32, i32) {
    %c0_i32 = arith.constant 0 : i32
    %c0_i32_0 = arith.constant 0 : i32
    return %arg0, %c0_i32 : i32, i32
  }
  func.func @transform_2(%arg0: i32) -> (i32, i32) {
    %c0_i32 = arith.constant 0 : i32
    %c0_i32_0 = arith.constant 0 : i32
    return %arg0, %c0_i32 : i32, i32
  }
  func.func @transform_3(%arg0: i32) -> (i32, i32) {
    %c0_i32 = arith.constant 0 : i32
    %c0_i32_0 = arith.constant 0 : i32
    return %arg0, %c0_i32 : i32, i32
  }
  func.func @transform_4(%arg0: i32) -> (i32, i32) {
    %c0_i32 = arith.constant 0 : i32
    %c0_i32_0 = arith.constant 0 : i32
    return %arg0, %c0_i32 : i32, i32
  }
}

module attributes {stable_mosaic.version = 11 : i64} {
  func.func @_matmul_bias_kernel(%arg0: i32, %arg1: memref<200x400xf32, #tpu.memory_space<vmem>>, %arg2: memref<400x128xf32, #tpu.memory_space<vmem>>, %arg3: memref<1x128xf32, #tpu.memory_space<vmem>>, %arg4: memref<200x128xf32, #tpu.memory_space<vmem>>) attributes {dimension_semantics = [#tpu.dimension_semantics<parallel>], iteration_bounds = array<i64: 1>, scalar_prefetch = 0 : i64, scratch_operands = 0 : i64, tpu.core_type = #tpu.core_type<tc>, window_params = [{transform_indices = @transform_0, window_bounds = array<i64: 200, 400>}, {pipeline_mode = #tpu.pipeline_mode<synchronous>, transform_indices = @transform_1, window_bounds = array<i64: 400, 128>}, {pipeline_mode = #tpu.pipeline_mode<synchronous>, transform_indices = @transform_2, window_bounds = array<i64: 1, 128>}, {transform_indices = @transform_3, window_bounds = array<i64: 200, 128>}]} {
    %c0 = arith.constant 0 : index
    %c0_0 = arith.constant 0 : index
    %0 = vector.load %arg1[%c0, %c0_0] : memref<200x400xf32, #tpu.memory_space<vmem>>, vector<200x400xf32>
    %c0_1 = arith.constant 0 : index
    %c0_2 = arith.constant 0 : index
    %1 = vector.load %arg2[%c0_1, %c0_2] : memref<400x128xf32, #tpu.memory_space<vmem>>, vector<400x128xf32>
    %cst = arith.constant dense<0.000000e+00> : vector<200x128xf32>
    %2 = tpu.matmul %0, %1, %cst {dimension_numbers = #tpu.dot_dimension_numbers<[1], [0], [0], [1], [0, 0, 1, 1], [], []>} : vector<200x400xf32>, vector<400x128xf32>, vector<200x128xf32> -> vector<200x128xf32>
    %c0_3 = arith.constant 0 : index
    %c0_4 = arith.constant 0 : index
    %3 = vector.load %arg3[%c0_3, %c0_4] : memref<1x128xf32, #tpu.memory_space<vmem>>, vector<1x128xf32>
    %4 = vector.broadcast %3 : vector<1x128xf32> to vector<200x128xf32>
    %5 = arith.addf %2, %4 : vector<200x128xf32>
    %c0_5 = arith.constant 0 : index
    %c0_6 = arith.constant 0 : index
    %6 = vector.load %arg4[%c0_5, %c0_6] : memref<200x128xf32, #tpu.memory_space<vmem>>, vector<200x128xf32>
    tpu.vector_store %arg4[%c0_5, %c0_6], %5 {strides = array<i32>} : memref<200x128xf32, #tpu.memory_space<vmem>>, vector<200x128xf32>,
    return
  }
  func.func @transform_0(%arg0: i32) -> (i32, i32) {
    %c0_i32 = arith.constant 0 : i32
    %c0_i32_0 = arith.constant 0 : i32
    return %arg0, %c0_i32 : i32, i32
  }
  func.func @transform_1(%arg0: i32) -> (i32, i32) {
    %c0_i32 = arith.constant 0 : i32
    %c0_i32_0 = arith.constant 0 : i32
    %c0_i32_1 = arith.constant 0 : i32
    return %c0_i32, %c0_i32_0 : i32, i32
  }
  func.func @transform_2(%arg0: i32) -> (i32, i32) {
    %c0_i32 = arith.constant 0 : i32
    %c0_i32_0 = arith.constant 0 : i32
    %c0_i32_1 = arith.constant 0 : i32
    return %c0_i32, %c0_i32_0 : i32, i32
  }
  func.func @transform_3(%arg0: i32) -> (i32, i32) {
    %c0_i32 = arith.constant 0 : i32
    %c0_i32_0 = arith.constant 0 : i32
    return %arg0, %c0_i32 : i32, i32
  }
}

module attributes {stable_mosaic.version = 11 : i64} {
  func.func @_max4_kernel(%arg0: i32, %arg1: memref<50x128xf32, #tpu.memory_space<vmem>>, %arg2: memref<50x128xf32, #tpu.memory_space<vmem>>, %arg3: memref<50x128xf32, #tpu.memory_space<vmem>>, %arg4: memref<50x128xf32, #tpu.memory_space<vmem>>, %arg5: memref<50x128xf32, #tpu.memory_space<vmem>>) attributes {dimension_semantics = [#tpu.dimension_semantics<parallel>], iteration_bounds = array<i64: 1>, scalar_prefetch = 0 : i64, scratch_operands = 0 : i64, tpu.core_type = #tpu.core_type<tc>, window_params = [{transform_indices = @transform_0, window_bounds = array<i64: 50, 128>}, {transform_indices = @transform_1, window_bounds = array<i64: 50, 128>}, {transform_indices = @transform_2, window_bounds = array<i64: 50, 128>}, {transform_indices = @transform_3, window_bounds = array<i64: 50, 128>}, {transform_indices = @transform_4, window_bounds = array<i64: 50, 128>}]} {
    %c0 = arith.constant 0 : index
    %c0_0 = arith.constant 0 : index
    %0 = vector.load %arg1[%c0, %c0_0] : memref<50x128xf32, #tpu.memory_space<vmem>>, vector<50x128xf32>
    %c0_1 = arith.constant 0 : index
    %c0_2 = arith.constant 0 : index
    %1 = vector.load %arg2[%c0_1, %c0_2] : memref<50x128xf32, #tpu.memory_space<vmem>>, vector<50x128xf32>
    %2 = arith.maximumf %0, %1 : vector<50x128xf32>
    %c0_3 = arith.constant 0 : index
    %c0_4 = arith.constant 0 : index
    %3 = vector.load %arg3[%c0_3, %c0_4] : memref<50x128xf32, #tpu.memory_space<vmem>>, vector<50x128xf32>
    %c0_5 = arith.constant 0 : index
    %c0_6 = arith.constant 0 : index
    %4 = vector.load %arg4[%c0_5, %c0_6] : memref<50x128xf32, #tpu.memory_space<vmem>>, vector<50x128xf32>
    %5 = arith.maximumf %3, %4 : vector<50x128xf32>
    %6 = arith.maximumf %2, %5 : vector<50x128xf32>
    %c0_7 = arith.constant 0 : index
    %c0_8 = arith.constant 0 : index
    %7 = vector.load %arg5[%c0_7, %c0_8] : memref<50x128xf32, #tpu.memory_space<vmem>>, vector<50x128xf32>
    tpu.vector_store %arg5[%c0_7, %c0_8], %6 {strides = array<i32>} : memref<50x128xf32, #tpu.memory_space<vmem>>, vector<50x128xf32>,
    return
  }
  func.func @transform_0(%arg0: i32) -> (i32, i32) {
    %c0_i32 = arith.constant 0 : i32
    %c0_i32_0 = arith.constant 0 : i32
    return %arg0, %c0_i32 : i32, i32
  }
  func.func @transform_1(%arg0: i32) -> (i32, i32) {
    %c0_i32 = arith.constant 0 : i32
    %c0_i32_0 = arith.constant 0 : i32
    return %arg0, %c0_i32 : i32, i32
  }
  func.func @transform_2(%arg0: i32) -> (i32, i32) {
    %c0_i32 = arith.constant 0 : i32
    %c0_i32_0 = arith.constant 0 : i32
    return %arg0, %c0_i32 : i32, i32
  }
  func.func @transform_3(%arg0: i32) -> (i32, i32) {
    %c0_i32 = arith.constant 0 : i32
    %c0_i32_0 = arith.constant 0 : i32
    return %arg0, %c0_i32 : i32, i32
  }
  func.func @transform_4(%arg0: i32) -> (i32, i32) {
    %c0_i32 = arith.constant 0 : i32
    %c0_i32_0 = arith.constant 0 : i32
    return %arg0, %c0_i32 : i32, i32
  }
}

module attributes {stable_mosaic.version = 11 : i64} {
  func.func @_fc_tail_kernel(%arg0: i32, %arg1: memref<2x800xf32, #tpu.memory_space<vmem>>, %arg2: memref<800x32xf32, #tpu.memory_space<vmem>>, %arg3: memref<1x32xf32, #tpu.memory_space<vmem>>, %arg4: memref<32x10xf32, #tpu.memory_space<vmem>>, %arg5: memref<1x10xf32, #tpu.memory_space<vmem>>, %arg6: memref<2x10xf32, #tpu.memory_space<vmem>>) attributes {dimension_semantics = [#tpu.dimension_semantics<parallel>], iteration_bounds = array<i64: 1>, scalar_prefetch = 0 : i64, scratch_operands = 0 : i64, tpu.core_type = #tpu.core_type<tc>, window_params = [{transform_indices = @transform_0, window_bounds = array<i64: 2, 800>}, {pipeline_mode = #tpu.pipeline_mode<synchronous>, transform_indices = @transform_1, window_bounds = array<i64: 800, 32>}, {pipeline_mode = #tpu.pipeline_mode<synchronous>, transform_indices = @transform_2, window_bounds = array<i64: 1, 32>}, {pipeline_mode = #tpu.pipeline_mode<synchronous>, transform_indices = @transform_3, window_bounds = array<i64: 32, 10>}, {pipeline_mode = #tpu.pipeline_mode<synchronous>, transform_indices = @transform_4, window_bounds = array<i64: 1, 10>}, {transform_indices = @transform_5, window_bounds = array<i64: 2, 10>}]} {
    %c0 = arith.constant 0 : index
    %c0_0 = arith.constant 0 : index
    %0 = vector.load %arg1[%c0, %c0_0] : memref<2x800xf32, #tpu.memory_space<vmem>>, vector<2x800xf32>
    %c0_1 = arith.constant 0 : index
    %c0_2 = arith.constant 0 : index
    %1 = vector.load %arg2[%c0_1, %c0_2] : memref<800x32xf32, #tpu.memory_space<vmem>>, vector<800x32xf32>
    %cst = arith.constant dense<0.000000e+00> : vector<2x32xf32>
    %2 = tpu.matmul %0, %1, %cst {dimension_numbers = #tpu.dot_dimension_numbers<[1], [0], [0], [1], [0, 0, 1, 1], [], []>} : vector<2x800xf32>, vector<800x32xf32>, vector<2x32xf32> -> vector<2x32xf32>
    %c0_3 = arith.constant 0 : index
    %c0_4 = arith.constant 0 : index
    %3 = vector.load %arg3[%c0_3, %c0_4] : memref<1x32xf32, #tpu.memory_space<vmem>>, vector<1x32xf32>
    %4 = vector.broadcast %3 : vector<1x32xf32> to vector<2x32xf32>
    %5 = arith.addf %2, %4 : vector<2x32xf32>
    %cst_5 = arith.constant 0.000000e+00 : f32
    %6 = vector.broadcast %cst_5 : f32 to vector<2x32xf32>
    %7 = arith.maximumf %5, %6 : vector<2x32xf32>
    %c0_6 = arith.constant 0 : index
    %c0_7 = arith.constant 0 : index
    %8 = vector.load %arg4[%c0_6, %c0_7] : memref<32x10xf32, #tpu.memory_space<vmem>>, vector<32x10xf32>
    %cst_8 = arith.constant dense<0.000000e+00> : vector<2x10xf32>
    %9 = tpu.matmul %7, %8, %cst_8 {dimension_numbers = #tpu.dot_dimension_numbers<[1], [0], [0], [1], [0, 0, 1, 1], [], []>} : vector<2x32xf32>, vector<32x10xf32>, vector<2x10xf32> -> vector<2x10xf32>
    %c0_9 = arith.constant 0 : index
    %c0_10 = arith.constant 0 : index
    %10 = vector.load %arg5[%c0_9, %c0_10] : memref<1x10xf32, #tpu.memory_space<vmem>>, vector<1x10xf32>
    %11 = vector.broadcast %10 : vector<1x10xf32> to vector<2x10xf32>
    %12 = arith.addf %9, %11 : vector<2x10xf32>
    %c0_11 = arith.constant 0 : index
    %c0_12 = arith.constant 0 : index
    %13 = vector.load %arg6[%c0_11, %c0_12] : memref<2x10xf32, #tpu.memory_space<vmem>>, vector<2x10xf32>
    tpu.vector_store %arg6[%c0_11, %c0_12], %12 {strides = array<i32>} : memref<2x10xf32, #tpu.memory_space<vmem>>, vector<2x10xf32>,
    return
  }
  func.func @transform_0(%arg0: i32) -> (i32, i32) {
    %c0_i32 = arith.constant 0 : i32
    %c0_i32_0 = arith.constant 0 : i32
    return %arg0, %c0_i32 : i32, i32
  }
  func.func @transform_1(%arg0: i32) -> (i32, i32) {
    %c0_i32 = arith.constant 0 : i32
    %c0_i32_0 = arith.constant 0 : i32
    %c0_i32_1 = arith.constant 0 : i32
    return %c0_i32, %c0_i32_0 : i32, i32
  }
  func.func @transform_2(%arg0: i32) -> (i32, i32) {
    %c0_i32 = arith.constant 0 : i32
    %c0_i32_0 = arith.constant 0 : i32
    %c0_i32_1 = arith.constant 0 : i32
    return %c0_i32, %c0_i32_0 : i32, i32
  }
  func.func @transform_3(%arg0: i32) -> (i32, i32) {
    %c0_i32 = arith.constant 0 : i32
    %c0_i32_0 = arith.constant 0 : i32
    %c0_i32_1 = arith.constant 0 : i32
    return %c0_i32, %c0_i32_0 : i32, i32
  }
  func.func @transform_4(%arg0: i32) -> (i32, i32) {
    %c0_i32 = arith.constant 0 : i32
    %c0_i32_0 = arith.constant 0 : i32
    %c0_i32_1 = arith.constant 0 : i32
    return %c0_i32, %c0_i32_0 : i32, i32
  }
  func.func @transform_5(%arg0: i32) -> (i32, i32) {
    %c0_i32 = arith.constant 0 : i32
    %c0_i32_0 = arith.constant 0 : i32
    return %arg0, %c0_i32 : i32, i32
  }
}

</mosaic_0001>

<bundles_post_ra>
// kernel: lenet5_forward.5
= control target key start
LH: loop header
LB: loop body
LE: loop exit
PB: predicated region body
PF: predicated region fallthrough
CT: control target
= control target key end

     0   :  { %s1163_s12 = smov 0   ;;  %s1520_s0 = inlined_call_operand.vmem [shape: f32[1568,75], index: 0, kind: input, shape index: {}]   ;;  %s1521_s1 = inlined_call_operand.vmem [shape: f32[75,128], index: 1, kind: input, shape index: {}]   ;;  %s1522_s2 = inlined_call_operand.vmem [shape: f32[1,128], index: 2, kind: input, shape index: {}]   ;;  %s1523_s3 = inlined_call_operand.vmem [shape: f32[1568,128], index: 3, kind: output, shape index: {}]  }
   0x1 LB: > { %s807_s13 = sadd.s32 4294967295, %s1137_s12   ;;  %p811_p0 = scmp.ge.s32.totalorder %s1137_s12, 1  ;;  %s1137_s12 = sphi %s1163_s12, %s13_s12  }
   0x2   : > { %p138_p1 = scmp.lt.s32.totalorder %s1137_s12, 5 }
   0x4   : > { %p139_p2 = pnand %p811_p0, %p138_p1 }
   0x5   : > { %v223_v0 = vld [vmem:[%s1521_s1] sm:$0xff] (!%p139_p2)  ;;  %v224_v1 = vld [vmem:[%s1521_s1 + $0x8] sm:$0xff] (!%p139_p2)  ;;  %v225_v2 = vld [vmem:[%s1521_s1 + $0x10] sm:$0xff] (!%p139_p2)  ;;  %v1139_v3 = vmov (!%p139_p2), 0.0|0.0   ;;  %s162_s22 = smul.u32 (!%p139_p2), 49, %s807_s13  ;;  %vm1140_vm0 = vmmov (!%p139_p2), 0  }
   0x6   : > { %142 = sbr.rel (%p139_p2) target bundleno = 338 (0x152), region = 32  ;;  %1093 = vmatprep.subr.bf16.mxu0 (!%p139_p2), %v1139_v3  ;;  %v1094_v4 = vpack.c.bf16 (!%p139_p2), %v224_v1, %v223_v0  ;;  %1109 = vmatprep.subr.bf16.mxu1 (!%p139_p2), %v1139_v3  ;;  %v226_v5 = vld [vmem:[%s1521_s1 + $0x18] sm:$0xff] (!%p139_p2)  ;;  %v1141_v6 = vmov (!%p139_p2), 0.0   ;;  %v227_v8 = vld [vmem:[%s1521_s1 + $0x20] sm:$0xff] (!%p139_p2)  ;;  %v228_v9 = vld [vmem:[%s1521_s1 + $0x28] sm:$0xff] (!%p139_p2)  ;;  %vm388_vm1 = vcmask (!%p139_p2), 1042432  }
   0x7   : > { %946 = vmatprep.mubr.msk.f32.mxu0 (!%p139_p2), %vm1140_vm0, %v1141_v6  ;;  %1021 = vmatprep.mubr.msk.f32.mxu1 (!%p139_p2), %vm1140_vm0, %v1141_v6  ;;  %v1097_v7 = vpack.c.bf16 (!%p139_p2), %v226_v5, %v225_v2  ;;  %p163_p3 = scmp.lt.s32.totalorder (!%p139_p2), %s162_s22, 195  ;;  %v1100_v10 = vpack.c.bf16 (!%p139_p2), %v228_v9, %v227_v8  ;;  %v229_v11 = vld [vmem:[%s1521_s1 + $0x30] sm:$0xff] (!%p139_p2)  ;;  %v230_v12 = vld [vmem:[%s1521_s1 + $0x38] sm:$0xff] (!%p139_p2)  ;;  %v231_v14 = vld [vmem:[%s1521_s1 + $0x40] sm:$0xff] (!%p139_p2)  ;;  %vm1142_vm2 = vmmov (!%p139_p2), 1   ;;  %vm240_vm4 = vcmask (!%p139_p2), 613376  }
   0x8   : > { %1095 = vmatpush3.bf16.msra.mxu0 (!%p139_p2), %v1094_v4  ;;  %1114 = vmatpush3.bf16.msra.mxu1 (!%p139_p2), %v1094_v4  ;;  %v1103_v13 = vpack.c.bf16 (!%p139_p2), %v230_v12, %v229_v11  ;;  %v232_v15 = vld [vmem:[%s1521_s1 + $0x48] sm:$0x7] (!%p139_p2)  ;;  %vm1107_vm3 = vmpackc.low (!%p139_p2), %vm388_vm1, %vm1142_vm2  ;;  %v1410_v2 = vld [vmem:[%s1522_s2] ss:$0 sm:$0xff] (!%p139_p2) }
   0x9   : > { %1096 = vmatprep.subr.bf16.mxu0 (!%p139_p2), %v1139_v3  ;;  %1110 = vmatprep.subr.bf16.mxu1 (!%p139_p2), %v1139_v3  ;;  %v1106_v16 = vpack.c.bf16 (!%p139_p2), %v232_v15, %v231_v14 }
   0xc   : > { %1098 = vmatpush3.bf16.msra.mxu0 (!%p139_p2), %v1097_v7  ;;  %1115 = vmatpush3.bf16.msra.mxu1 (!%p139_p2), %v1097_v7 }
   0xd   : > { %1099 = vmatprep.subr.bf16.mxu0 %v1139_v3  ;;  %1111 = vmatprep.subr.bf16.mxu1 %v1139_v3  ;;  %s1525_s22 = smov (!%p163_p3, %s162_s22), 195 }
   0xe   : > { %s812_s8 = sshll.u32 %s1525_s22, 3 }
   0xf   : > { %s1213_s11 = scalar_lea.vmem %s1520_s0, %s812_s8  ;;  %s1417_s17 = scalar_lea.vmem %s1523_s3, %s812_s8 }
  0x10   : > { %1101 = vmatpush3.bf16.msra.mxu0 %v1100_v10  ;;  %1116 = vmatpush3.bf16.msra.mxu1 %v1100_v10  ;;  %v174_v17 = vld [vmem:[%s1213_s11] sm:$0xff]  ;;  %v199_v18 = vld [vmem:[%s1213_s11 + $0xc8] sm:$0xff]  ;;  %v200_v20 = vld [vmem:[%s1213_s11 + $0xd0] sm:$0xff] }
  0x11   : > { %1102 = vmatprep.subr.bf16.mxu0 %v1139_v3  ;;  %1112 = vmatprep.subr.bf16.mxu1 %v1139_v3  ;;  %v175_v19 = vld [vmem:[%s1213_s11 + $0x8] sm:$0xff]  ;;  %v176_v21 = vld [vmem:[%s1213_s11 + $0x10] sm:$0xff]  ;;  %v201_v22 = vld [vmem:[%s1213_s11 + $0xd8] sm:$0xff] }
  0x12   : > { %v177_v23 = vld [vmem:[%s1213_s11 + $0x18] sm:$0xff]  ;;  %v202_v24 = vld [vmem:[%s1213_s11 + $0xe0] sm:$0xff]  ;;  %v203_v26 = vld [vmem:[%s1213_s11 + $0xe8] sm:$0xff] }
  0x13   : > { %v178_v25 = vld [vmem:[%s1213_s11 + $0x20] sm:$0xff]  ;;  %v179_v27 = vld [vmem:[%s1213_s11 + $0x28] sm:$0xff]  ;;  %v204_v28 = vld [vmem:[%s1213_s11 + $0xf0] sm:$0xff] }
  0x14   : > { %1104 = vmatpush3.bf16.msra.mxu0 %v1103_v13  ;;  %1117 = vmatpush3.bf16.msra.mxu1 %v1103_v13  ;;  %v180_v29 = vld [vmem:[%s1213_s11 + $0x30] sm:$0xff]  ;;  %v205_v30 = vld [vmem:[%s1213_s11 + $0xf8] sm:$0xff]  ;;  %v206_v32 = vld [vmem:[%s1213_s11 + $0x100] sm:$0xff] }
  0x15   : > { %1105 = vmatprep.subr.bf16.mxu0 %v1139_v3  ;;  %1113 = vmatprep.subr.bf16.mxu1 %v1139_v3  ;;  %v181_v31 = vld [vmem:[%s1213_s11 + $0x38] sm:$0xff]  ;;  %v182_v33 = vld [vmem:[%s1213_s11 + $0x40] sm:$0xff]  ;;  %v207_v34 = vld [vmem:[%s1213_s11 + $0x108] sm:$0xff] }
  0x16   : > { %v183_v35 = vld [vmem:[%s1213_s11 + $0x48] sm:$0xff]  ;;  %v208_v36 = vld [vmem:[%s1213_s11 + $0x110] sm:$0xff]  ;;  %v209_v38 = vld [vmem:[%s1213_s11 + $0x118] sm:$0xff] }
  0x17   : > { %v184_v37 = vld [vmem:[%s1213_s11 + $0x50] sm:$0xff]  ;;  %v185_v39 = vld [vmem:[%s1213_s11 + $0x58] sm:$0xff]  ;;  %v210_v40 = vld [vmem:[%s1213_s11 + $0x120] sm:$0xff] }
  0x18   : > { %1108 = vmatpush3.bf16.msk.msra.mxu0 %vm1107_vm3, %v1106_v16  ;;  %1118 = vmatpush3.bf16.msk.msra.mxu1 %vm1107_vm3, %v1106_v16  ;;  %v186_v41 = vld [vmem:[%s1213_s11 + $0x60] sm:$0xff]  ;;  %v211_v42 = vld [vmem:[%s1213_s11 + $0x128] sm:$0xff]  ;;  %v212_v44 = vld [vmem:[%s1213_s11 + $0x130] sm:$0xff] }
  0x19   : > { %v187_v43 = vld [vmem:[%s1213_s11 + $0x68] sm:$0xff]  ;;  %v188_v45 = vld [vmem:[%s1213_s11 + $0x70] sm:$0xff]  ;;  %v213_v46 = vld [vmem:[%s1213_s11 + $0x138] sm:$0xff] }
  0x1a   : > { %v189_v47 = vld [vmem:[%s1213_s11 + $0x78] sm:$0xff]  ;;  %v214_v48 = vld [vmem:[%s1213_s11 + $0x140] sm:$0xff]  ;;  %v215_v50 = vld [vmem:[%s1213_s11 + $0x148] sm:$0xff] }
  0x1b   : > { %947 = vmatmul.mubr.msk.f32.vlgmr.msra.gmra.mrb[0].mxu0 %vm240_vm4, %v174_v17  ;;  %1022 = vmatmul.mubr.msk.f32.vlgmr.msra.gmra.mrb[0].mxu1 %vm240_vm4, %v199_v18  ;;  %v190_v49 = vld [vmem:[%s1213_s11 + $0x80] sm:$0xff]  ;;  %v191_v51 = vld [vmem:[%s1213_s11 + $0x88] sm:$0xff]  ;;  %v216_v52 = vld [vmem:[%s1213_s11 + $0x150] sm:$0xff] }
  0x1c   : > { %949 = vmatprep.mubr.msk.f32.mxu0 %vm1140_vm0, %v1141_v6  ;;  %1024 = vmatprep.mubr.msk.f32.mxu1 %vm1140_vm0, %v1141_v6  ;;  %v192_v53 = vld [vmem:[%s1213_s11 + $0x90] sm:$0xff]  ;;  %v217_v54 = vld [vmem:[%s1213_s11 + $0x158] sm:$0xff]  ;;  %v218_v56 = vld [vmem:[%s1213_s11 + $0x160] sm:$0xff] }
  0x1d   : > { %v193_v55 = vld [vmem:[%s1213_s11 + $0x98] sm:$0xff]  ;;  %v194_v57 = vld [vmem:[%s1213_s11 + $0xa0] sm:$0xff]  ;;  %v219_v58 = vld [vmem:[%s1213_s11 + $0x168] sm:$0xff] }
  0x1e   : > { %v195_v59 = vld [vmem:[%s1213_s11 + $0xa8] sm:$0xff]  ;;  %v220_v60 = vld [vmem:[%s1213_s11 + $0x170] sm:$0xff]  ;;  %v221_v62 = vld [vmem:[%s1213_s11 + $0x178] sm:$0xff] }
  0x1f   : > { %950 = vmatmul.mubr.msk.f32.gmra.mrb[2].mxu0 %vm240_vm4, %v175_v19  ;;  %1025 = vmatmul.mubr.msk.f32.gmra.mrb[2].mxu1 %vm240_vm4, %v200_v20  ;;  %v196_v61 = vld [vmem:[%s1213_s11 + $0xb0] sm:$0xff]  ;;  %v197_v63 = vld [vmem:[%s1213_s11 + $0xb8] sm:$0xff]  ;;  %v222_v0 = vld [vmem:[%s1213_s11 + $0x180] sm:$0xff] }
  0x20   : > { %952 = vmatprep.mubr.msk.f32.mxu0 %vm1140_vm0, %v1141_v6  ;;  %1027 = vmatprep.mubr.msk.f32.mxu1 %vm1140_vm0, %v1141_v6  ;;  %v198_v1 = vld [vmem:[%s1213_s11 + $0xc0] sm:$0xff] }
  0x23   : > { %953 = vmatmul.mubr.msk.f32.gmra.mrb[4].mxu0 %vm240_vm4, %v176_v21  ;;  %1028 = vmatmul.mubr.msk.f32.gmra.mrb[4].mxu1 %vm240_vm4, %v201_v22 }
  0x24   : > { %955 = vmatprep.mubr.msk.f32.mxu0 %vm1140_vm0, %v1141_v6  ;;  %1030 = vmatprep.mubr.msk.f32.mxu1 %vm1140_vm0, %v1141_v6 }
  0x27   : > { %956 = vmatmul.mubr.msk.f32.gmra.mrb[6].mxu0 %vm240_vm4, %v177_v23  ;;  %1031 = vmatmul.mubr.msk.f32.gmra.mrb[6].mxu1 %vm240_vm4, %v202_v24 }
  0x28   : > { %958 = vmatprep.mubr.msk.f32.mxu0 %vm1140_vm0, %v1141_v6  ;;  %1033 = vmatprep.mubr.msk.f32.mxu1 %vm1140_vm0, %v1141_v6 }
  0x2b   : > { %959 = vmatmul.mubr.msk.f32.gmra.mrb[8].mxu0 %vm240_vm4, %v178_v25  ;;  %1034 = vmatmul.mubr.msk.f32.gmra.mrb[8].mxu1 %vm240_vm4, %v203_v26 }
  0x2c   : > { %961 = vmatprep.mubr.msk.f32.mxu0 %vm1140_vm0, %v1141_v6  ;;  %1036 = vmatprep.mubr.msk.f32.mxu1 %vm1140_vm0, %v1141_v6 }
  0x2f   : > { %962 = vmatmul.mubr.msk.f32.gmra.mrb[10].mxu0 %vm240_vm4, %v179_v27  ;;  %1037 = vmatmul.mubr.msk.f32.gmra.mrb[10].mxu1 %vm240_vm4, %v204_v28 }
  0x30   : > { %964 = vmatprep.mubr.msk.f32.mxu0 %vm1140_vm0, %v1141_v6  ;;  %1039 = vmatprep.mubr.msk.f32.mxu1 %vm1140_vm0, %v1141_v6 }
  0x33   : > { %965 = vmatmul.mubr.msk.f32.gmra.mrb[12].mxu0 %vm240_vm4, %v180_v29  ;;  %1040 = vmatmul.mubr.msk.f32.gmra.mrb[12].mxu1 %vm240_vm4, %v205_v30 }
  0x34   : > { %967 = vmatprep.mubr.msk.f32.mxu0 %vm1140_vm0, %v1141_v6  ;;  %1042 = vmatprep.mubr.msk.f32.mxu1 %vm1140_vm0, %v1141_v6 }
  0x37   : > { %968 = vmatmul.mubr.msk.f32.gmra.mrb[14].mxu0 %vm240_vm4, %v181_v31  ;;  %1043 = vmatmul.mubr.msk.f32.gmra.mrb[14].mxu1 %vm240_vm4, %v206_v32 }
  0x38   : > { %970 = vmatprep.mubr.msk.f32.mxu0 %vm1140_vm0, %v1141_v6  ;;  %1045 = vmatprep.mubr.msk.f32.mxu1 %vm1140_vm0, %v1141_v6 }
  0x3b   : > { %971 = vmatmul.mubr.msk.f32.gmra.mrb[16].mxu0 %vm240_vm4, %v182_v33  ;;  %1046 = vmatmul.mubr.msk.f32.gmra.mrb[16].mxu1 %vm240_vm4, %v207_v34 }
  0x3c   : > { %973 = vmatprep.mubr.msk.f32.mxu0 %vm1140_vm0, %v1141_v6  ;;  %1048 = vmatprep.mubr.msk.f32.mxu1 %vm1140_vm0, %v1141_v6 }
  0x3f   : > { %974 = vmatmul.mubr.msk.f32.gmra.mrb[18].mxu0 %vm240_vm4, %v183_v35  ;;  %1049 = vmatmul.mubr.msk.f32.gmra.mrb[18].mxu1 %vm240_vm4, %v208_v36 }
  0x40   : > { %976 = vmatprep.mubr.msk.f32.mxu0 %vm1140_vm0, %v1141_v6  ;;  %1051 = vmatprep.mubr.msk.f32.mxu1 %vm1140_vm0, %v1141_v6 }
  0x43   : > { %977 = vmatmul.mubr.msk.f32.gmra.mrb[20].mxu0 %vm240_vm4, %v184_v37  ;;  %1052 = vmatmul.mubr.msk.f32.gmra.mrb[20].mxu1 %vm240_vm4, %v209_v38 }
  0x44   : > { %979 = vmatprep.mubr.msk.f32.mxu0 %vm1140_vm0, %v1141_v6  ;;  %1054 = vmatprep.mubr.msk.f32.mxu1 %vm1140_vm0, %v1141_v6 }
  0x47   : > { %980 = vmatmul.mubr.msk.f32.gmra.mrb[22].mxu0 %vm240_vm4, %v185_v39  ;;  %1055 = vmatmul.mubr.msk.f32.gmra.mrb[22].mxu1 %vm240_vm4, %v210_v40 }
  0x48   : > { %982 = vmatprep.mubr.msk.f32.mxu0 %vm1140_vm0, %v1141_v6  ;;  %1057 = vmatprep.mubr.msk.f32.mxu1 %vm1140_vm0, %v1141_v6 }
  0x4b   : > { %983 = vmatmul.mubr.msk.f32.gmra.mrb[24].mxu0 %vm240_vm4, %v186_v41  ;;  %1058 = vmatmul.mubr.msk.f32.gmra.mrb[24].mxu1 %vm240_vm4, %v211_v42 }
  0x4c   : > { %985 = vmatprep.mubr.msk.f32.mxu0 %vm1140_vm0, %v1141_v6  ;;  %1060 = vmatprep.mubr.msk.f32.mxu1 %vm1140_vm0, %v1141_v6 }
  0x4f   : > { %986 = vmatmul.mubr.msk.f32.gmra.mrb[26].mxu0 %vm240_vm4, %v187_v43  ;;  %1061 = vmatmul.mubr.msk.f32.gmra.mrb[26].mxu1 %vm240_vm4, %v212_v44 }
  0x50   : > { %988 = vmatprep.mubr.msk.f32.mxu0 %vm1140_vm0, %v1141_v6  ;;  %1063 = vmatprep.mubr.msk.f32.mxu1 %vm1140_vm0, %v1141_v6 }
  0x53   : > { %989 = vmatmul.mubr.msk.f32.gmra.mrb[28].mxu0 %vm240_vm4, %v188_v45  ;;  %1064 = vmatmul.mubr.msk.f32.gmra.mrb[28].mxu1 %vm240_vm4, %v213_v46 }
  0x54   : > { %991 = vmatprep.mubr.msk.f32.mxu0 %vm1140_vm0, %v1141_v6  ;;  %1066 = vmatprep.mubr.msk.f32.mxu1 %vm1140_vm0, %v1141_v6 }
  0x57   : > { %992 = vmatmul.mubr.msk.f32.gmra.mrb[30].mxu0 %vm240_vm4, %v189_v47  ;;  %1067 = vmatmul.mubr.msk.f32.gmra.mrb[30].mxu1 %vm240_vm4, %v214_v48 }
  0x58   : > { %994 = vmatprep.mubr.msk.f32.mxu0 %vm1140_vm0, %v1141_v6  ;;  %1069 = vmatprep.mubr.msk.f32.mxu1 %vm1140_vm0, %v1141_v6 }
  0x5b   : > { %995 = vmatmul.mubr.msk.f32.gmra.mrb[32].mxu0 %vm240_vm4, %v190_v49  ;;  %1070 = vmatmul.mubr.msk.f32.gmra.mrb[32].mxu1 %vm240_vm4, %v215_v50 }
  0x5c   : > { %997 = vmatprep.mubr.msk.f32.mxu0 %vm1140_vm0, %v1141_v6  ;;  %1072 = vmatprep.mubr.msk.f32.mxu1 %vm1140_vm0, %v1141_v6 }
  0x5f   : > { %998 = vmatmul.mubr.msk.f32.gmra.mrb[34].mxu0 %vm240_vm4, %v191_v51  ;;  %1073 = vmatmul.mubr.msk.f32.gmra.mrb[34].mxu1 %vm240_vm4, %v216_v52 }
  0x60   : > { %1000 = vmatprep.mubr.msk.f32.mxu0 %vm1140_vm0, %v1141_v6  ;;  %1075 = vmatprep.mubr.msk.f32.mxu1 %vm1140_vm0, %v1141_v6 }
  0x63   : > { %1001 = vmatmul.mubr.msk.f32.gmra.mrb[36].mxu0 %vm240_vm4, %v192_v53  ;;  %1076 = vmatmul.mubr.msk.f32.gmra.mrb[36].mxu1 %vm240_vm4, %v217_v54 }
  0x64   : > { %1003 = vmatprep.mubr.msk.f32.mxu0 %vm1140_vm0, %v1141_v6  ;;  %1078 = vmatprep.mubr.msk.f32.mxu1 %vm1140_vm0, %v1141_v6 }
  0x67   : > { %1004 = vmatmul.mubr.msk.f32.gmra.mrb[38].mxu0 %vm240_vm4, %v193_v55  ;;  %1079 = vmatmul.mubr.msk.f32.gmra.mrb[38].mxu1 %vm240_vm4, %v218_v56 }
  0x68   : > { %1006 = vmatprep.mubr.msk.f32.mxu0 %vm1140_vm0, %v1141_v6  ;;  %1081 = vmatprep.mubr.msk.f32.mxu1 %vm1140_vm0, %v1141_v6 }
  0x6b   : > { %1007 = vmatmul.mubr.msk.f32.gmra.mrb[40].mxu0 %vm240_vm4, %v194_v57  ;;  %1082 = vmatmul.mubr.msk.f32.gmra.mrb[40].mxu1 %vm240_vm4, %v219_v58 }
  0x6c   : > { %1009 = vmatprep.mubr.msk.f32.mxu0 %vm1140_vm0, %v1141_v6  ;;  %1084 = vmatprep.mubr.msk.f32.mxu1 %vm1140_vm0, %v1141_v6 }
  0x6f   : > { %1010 = vmatmul.mubr.msk.f32.gmra.mrb[42].mxu0 %vm240_vm4, %v195_v59  ;;  %1085 = vmatmul.mubr.msk.f32.gmra.mrb[42].mxu1 %vm240_vm4, %v220_v60 }
  0x70   : > { %1012 = vmatprep.mubr.msk.f32.mxu0 %vm1140_vm0, %v1141_v6  ;;  %1087 = vmatprep.mubr.msk.f32.mxu1 %vm1140_vm0, %v1141_v6 }
  0x73   : > { %1013 = vmatmul.mubr.msk.f32.gmra.mrb[44].mxu0 %vm240_vm4, %v196_v61  ;;  %1088 = vmatmul.mubr.msk.f32.gmra.mrb[44].mxu1 %vm240_vm4, %v221_v62 }
  0x74   : > { %1015 = vmatprep.mubr.msk.f32.mxu0 %vm1140_vm0, %v1141_v6  ;;  %1090 = vmatprep.mubr.msk.f32.mxu1 %vm1140_vm0, %v1141_v6 }
  0x77   : > { %1016 = vmatmul.mubr.msk.f32.gmra.mrb[46].mxu0 %vm240_vm4, %v197_v63  ;;  %1091 = vmatmul.mubr.msk.f32.gmra.mrb[46].mxu1 %vm240_vm4, %v222_v0 }
  0x78   : > { %1018 = vmatprep.mubr.msk.f32.mxu0 %vm1140_vm0, %v1141_v6 }
  0x7b   : > { %1019 = vmatmul.mubr.msk.f32.gmra.mrb[48].mxu0 %vm240_vm4, %v198_v1 }
  0xee   : > { %v458_v3 = vpop.f32.mrb[0].mxu0  ;;  %v583_v4 = vpop.f32.mrb[0].mxu1 }
  0xef   : > { %v459_v5 = vadd.f32 %v1410_v2, %v458_v3  ;;  %v948_v6 = vpop.f32.mrb[1].mxu0  ;;  %v584_v7 = vadd.f32 %v1410_v2, %v583_v4  ;;  %v1023_v8 = vpop.f32.mrb[1].mxu1 }
  0xf1   : > { %702 = vst [vmem:[%s1417_s17] sm:$0xff] %v459_v5  ;;  %727 = vst [vmem:[%s1417_s17 + $0xc8] sm:$0xff] %v584_v7 }
  0xf2   : > { %v463_v9 = vpop.f32.mrb[2].mxu0  ;;  %v588_v10 = vpop.f32.mrb[2].mxu1 }
  0xf3   : > { %v464_v11 = vadd.f32 %v1410_v2, %v463_v9  ;;  %v951_v12 = vpop.f32.mrb[3].mxu0  ;;  %v589_v13 = vadd.f32 %v1410_v2, %v588_v10  ;;  %v1026_v14 = vpop.f32.mrb[3].mxu1 }
  0xf5   : > { %703 = vst [vmem:[%s1417_s17 + $0x8] sm:$0xff] %v464_v11  ;;  %728 = vst [vmem:[%s1417_s17 + $0xd0] sm:$0xff] %v589_v13 }
  0xf6   : > { %v468_v15 = vpop.f32.mrb[4].mxu0  ;;  %v593_v16 = vpop.f32.mrb[4].mxu1 }
  0xf7   : > { %v469_v17 = vadd.f32 %v1410_v2, %v468_v15  ;;  %v954_v18 = vpop.f32.mrb[5].mxu0  ;;  %v594_v19 = vadd.f32 %v1410_v2, %v593_v16  ;;  %v1029_v20 = vpop.f32.mrb[5].mxu1 }
  0xf9   : > { %704 = vst [vmem:[%s1417_s17 + $0x10] sm:$0xff] %v469_v17  ;;  %729 = vst [vmem:[%s1417_s17 + $0xd8] sm:$0xff] %v594_v19 }
  0xfa   : > { %v473_v21 = vpop.f32.mrb[6].mxu0  ;;  %v598_v22 = vpop.f32.mrb[6].mxu1 }
  0xfb   : > { %v474_v23 = vadd.f32 %v1410_v2, %v473_v21  ;;  %v957_v24 = vpop.f32.mrb[7].mxu0  ;;  %v599_v25 = vadd.f32 %v1410_v2, %v598_v22  ;;  %v1032_v26 = vpop.f32.mrb[7].mxu1 }
  0xfd   : > { %705 = vst [vmem:[%s1417_s17 + $0x18] sm:$0xff] %v474_v23  ;;  %730 = vst [vmem:[%s1417_s17 + $0xe0] sm:$0xff] %v599_v25 }
  0xfe   : > { %v478_v27 = vpop.f32.mrb[8].mxu0  ;;  %v603_v28 = vpop.f32.mrb[8].mxu1 }
  0xff   : > { %v479_v29 = vadd.f32 %v1410_v2, %v478_v27  ;;  %v960_v30 = vpop.f32.mrb[9].mxu0  ;;  %v604_v31 = vadd.f32 %v1410_v2, %v603_v28  ;;  %v1035_v32 = vpop.f32.mrb[9].mxu1 }
 0x101   : > { %706 = vst [vmem:[%s1417_s17 + $0x20] sm:$0xff] %v479_v29  ;;  %731 = vst [vmem:[%s1417_s17 + $0xe8] sm:$0xff] %v604_v31 }
 0x102   : > { %v483_v33 = vpop.f32.mrb[10].mxu0  ;;  %v608_v34 = vpop.f32.mrb[10].mxu1 }
 0x103   : > { %v484_v35 = vadd.f32 %v1410_v2, %v483_v33  ;;  %v963_v36 = vpop.f32.mrb[11].mxu0  ;;  %v609_v37 = vadd.f32 %v1410_v2, %v608_v34  ;;  %v1038_v38 = vpop.f32.mrb[11].mxu1 }
 0x105   : > { %707 = vst [vmem:[%s1417_s17 + $0x28] sm:$0xff] %v484_v35  ;;  %732 = vst [vmem:[%s1417_s17 + $0xf0] sm:$0xff] %v609_v37 }
 0x106   : > { %v488_v39 = vpop.f32.mrb[12].mxu0  ;;  %v613_v40 = vpop.f32.mrb[12].mxu1 }
 0x107   : > { %v489_v41 = vadd.f32 %v1410_v2, %v488_v39  ;;  %v966_v42 = vpop.f32.mrb[13].mxu0  ;;  %v614_v43 = vadd.f32 %v1410_v2, %v613_v40  ;;  %v1041_v44 = vpop.f32.mrb[13].mxu1 }
 0x109   : > { %708 = vst [vmem:[%s1417_s17 + $0x30] sm:$0xff] %v489_v41  ;;  %733 = vst [vmem:[%s1417_s17 + $0xf8] sm:$0xff] %v614_v43 }
 0x10a   : > { %v493_v45 = vpop.f32.mrb[14].mxu0  ;;  %v618_v46 = vpop.f32.mrb[14].mxu1 }
 0x10b   : > { %v494_v47 = vadd.f32 %v1410_v2, %v493_v45  ;;  %v969_v48 = vpop.f32.mrb[15].mxu0  ;;  %v619_v49 = vadd.f32 %v1410_v2, %v618_v46  ;;  %v1044_v50 = vpop.f32.mrb[15].mxu1 }
 0x10d   : > { %709 = vst [vmem:[%s1417_s17 + $0x38] sm:$0xff] %v494_v47  ;;  %734 = vst [vmem:[%s1417_s17 + $0x100] sm:$0xff] %v619_v49 }
 0x10e   : > { %v498_v51 = vpop.f32.mrb[16].mxu0  ;;  %v623_v52 = vpop.f32.mrb[16].mxu1 }
 0x10f   : > { %v499_v53 = vadd.f32 %v1410_v2, %v498_v51  ;;  %v972_v54 = vpop.f32.mrb[17].mxu0  ;;  %v624_v55 = vadd.f32 %v1410_v2, %v623_v52  ;;  %v1047_v56 = vpop.f32.mrb[17].mxu1 }
 0x111   : > { %710 = vst [vmem:[%s1417_s17 + $0x40] sm:$0xff] %v499_v53  ;;  %735 = vst [vmem:[%s1417_s17 + $0x108] sm:$0xff] %v624_v55 }
 0x112   : > { %v503_v57 = vpop.f32.mrb[18].mxu0  ;;  %v628_v58 = vpop.f32.mrb[18].mxu1 }
 0x113   : > { %v504_v59 = vadd.f32 %v1410_v2, %v503_v57  ;;  %v975_v60 = vpop.f32.mrb[19].mxu0  ;;  %v629_v61 = vadd.f32 %v1410_v2, %v628_v58  ;;  %v1050_v62 = vpop.f32.mrb[19].mxu1 }
 0x115   : > { %711 = vst [vmem:[%s1417_s17 + $0x48] sm:$0xff] %v504_v59  ;;  %736 = vst [vmem:[%s1417_s17 + $0x110] sm:$0xff] %v629_v61 }
 0x116   : > { %v508_v63 = vpop.f32.mrb[20].mxu0  ;;  %v633_v0 = vpop.f32.mrb[20].mxu1 }
 0x117   : > { %v509_v1 = vadd.f32 %v1410_v2, %v508_v63  ;;  %v978_v3 = vpop.f32.mrb[21].mxu0  ;;  %v634_v4 = vadd.f32 %v1410_v2, %v633_v0  ;;  %v1053_v5 = vpop.f32.mrb[21].mxu1 }
 0x119   : > { %712 = vst [vmem:[%s1417_s17 + $0x50] sm:$0xff] %v509_v1  ;;  %737 = vst [vmem:[%s1417_s17 + $0x118] sm:$0xff] %v634_v4 }
 0x11a   : > { %v513_v6 = vpop.f32.mrb[22].mxu0  ;;  %v638_v7 = vpop.f32.mrb[22].mxu1 }
 0x11b   : > { %v514_v8 = vadd.f32 %v1410_v2, %v513_v6  ;;  %v981_v9 = vpop.f32.mrb[23].mxu0  ;;  %v639_v10 = vadd.f32 %v1410_v2, %v638_v7  ;;  %v1056_v11 = vpop.f32.mrb[23].mxu1 }
 0x11d   : > { %713 = vst [vmem:[%s1417_s17 + $0x58] sm:$0xff] %v514_v8  ;;  %738 = vst [vmem:[%s1417_s17 + $0x120] sm:$0xff] %v639_v10 }
 0x11e   : > { %v518_v12 = vpop.f32.mrb[24].mxu0  ;;  %v643_v13 = vpop.f32.mrb[24].mxu1 }
 0x11f   : > { %v519_v14 = vadd.f32 %v1410_v2, %v518_v12  ;;  %v984_v15 = vpop.f32.mrb[25].mxu0  ;;  %v644_v16 = vadd.f32 %v1410_v2, %v643_v13  ;;  %v1059_v17 = vpop.f32.mrb[25].mxu1 }
 0x121   : > { %714 = vst [vmem:[%s1417_s17 + $0x60] sm:$0xff] %v519_v14  ;;  %739 = vst [vmem:[%s1417_s17 + $0x128] sm:$0xff] %v644_v16 }
 0x122   : > { %v523_v18 = vpop.f32.mrb[26].mxu0  ;;  %v648_v19 = vpop.f32.mrb[26].mxu1 }
 0x123   : > { %v524_v20 = vadd.f32 %v1410_v2, %v523_v18  ;;  %v987_v21 = vpop.f32.mrb[27].mxu0  ;;  %v649_v22 = vadd.f32 %v1410_v2, %v648_v19  ;;  %v1062_v23 = vpop.f32.mrb[27].mxu1 }
 0x125   : > { %715 = vst [vmem:[%s1417_s17 + $0x68] sm:$0xff] %v524_v20  ;;  %740 = vst [vmem:[%s1417_s17 + $0x130] sm:$0xff] %v649_v22 }
 0x126   : > { %v528_v24 = vpop.f32.mrb[28].mxu0  ;;  %v653_v25 = vpop.f32.mrb[28].mxu1 }
 0x127   : > { %v529_v26 = vadd.f32 %v1410_v2, %v528_v24  ;;  %v990_v27 = vpop.f32.mrb[29].mxu0  ;;  %v654_v28 = vadd.f32 %v1410_v2, %v653_v25  ;;  %v1065_v29 = vpop.f32.mrb[29].mxu1 }
 0x129   : > { %716 = vst [vmem:[%s1417_s17 + $0x70] sm:$0xff] %v529_v26  ;;  %741 = vst [vmem:[%s1417_s17 + $0x138] sm:$0xff] %v654_v28 }
 0x12a   : > { %v533_v30 = vpop.f32.mrb[30].mxu0  ;;  %v658_v31 = vpop.f32.mrb[30].mxu1 }
 0x12b   : > { %v534_v32 = vadd.f32 %v1410_v2, %v533_v30  ;;  %v993_v33 = vpop.f32.mrb[31].mxu0  ;;  %v659_v34 = vadd.f32 %v1410_v2, %v658_v31  ;;  %v1068_v35 = vpop.f32.mrb[31].mxu1 }
 0x12d   : > { %717 = vst [vmem:[%s1417_s17 + $0x78] sm:$0xff] %v534_v32  ;;  %742 = vst [vmem:[%s1417_s17 + $0x140] sm:$0xff] %v659_v34 }
 0x12e   : > { %v538_v36 = vpop.f32.mrb[32].mxu0  ;;  %v663_v37 = vpop.f32.mrb[32].mxu1 }
 0x12f   : > { %v539_v38 = vadd.f32 %v1410_v2, %v538_v36  ;;  %v996_v39 = vpop.f32.mrb[33].mxu0  ;;  %v664_v40 = vadd.f32 %v1410_v2, %v663_v37  ;;  %v1071_v41 = vpop.f32.mrb[33].mxu1 }
 0x131   : > { %718 = vst [vmem:[%s1417_s17 + $0x80] sm:$0xff] %v539_v38  ;;  %743 = vst [vmem:[%s1417_s17 + $0x148] sm:$0xff] %v664_v40 }
 0x132   : > { %v543_v42 = vpop.f32.mrb[34].mxu0  ;;  %v668_v43 = vpop.f32.mrb[34].mxu1 }
 0x133   : > { %v544_v44 = vadd.f32 %v1410_v2, %v543_v42  ;;  %v999_v45 = vpop.f32.mrb[35].mxu0  ;;  %v669_v46 = vadd.f32 %v1410_v2, %v668_v43  ;;  %v1074_v47 = vpop.f32.mrb[35].mxu1 }
 0x135   : > { %719 = vst [vmem:[%s1417_s17 + $0x88] sm:$0xff] %v544_v44  ;;  %744 = vst [vmem:[%s1417_s17 + $0x150] sm:$0xff] %v669_v46 }
 0x136   : > { %v548_v48 = vpop.f32.mrb[36].mxu0  ;;  %v673_v49 = vpop.f32.mrb[36].mxu1 }
 0x137   : > { %v549_v50 = vadd.f32 %v1410_v2, %v548_v48  ;;  %v1002_v51 = vpop.f32.mrb[37].mxu0  ;;  %v674_v52 = vadd.f32 %v1410_v2, %v673_v49  ;;  %v1077_v53 = vpop.f32.mrb[37].mxu1 }
 0x139   : > { %720 = vst [vmem:[%s1417_s17 + $0x90] sm:$0xff] %v549_v50  ;;  %745 = vst [vmem:[%s1417_s17 + $0x158] sm:$0xff] %v674_v52 }
 0x13a   : > { %v553_v54 = vpop.f32.mrb[38].mxu0  ;;  %v678_v55 = vpop.f32.mrb[38].mxu1 }
 0x13b   : > { %v554_v56 = vadd.f32 %v1410_v2, %v553_v54  ;;  %v1005_v57 = vpop.f32.mrb[39].mxu0  ;;  %v679_v58 = vadd.f32 %v1410_v2, %v678_v55  ;;  %v1080_v59 = vpop.f32.mrb[39].mxu1 }
 0x13d   : > { %721 = vst [vmem:[%s1417_s17 + $0x98] sm:$0xff] %v554_v56  ;;  %746 = vst [vmem:[%s1417_s17 + $0x160] sm:$0xff] %v679_v58 }
 0x13e   : > { %v558_v60 = vpop.f32.mrb[40].mxu0  ;;  %v683_v61 = vpop.f32.mrb[40].mxu1 }
 0x13f   : > { %v559_v62 = vadd.f32 %v1410_v2, %v558_v60  ;;  %v1008_v63 = vpop.f32.mrb[41].mxu0  ;;  %v684_v0 = vadd.f32 %v1410_v2, %v683_v61  ;;  %v1083_v1 = vpop.f32.mrb[41].mxu1 }
 0x141   : > { %722 = vst [vmem:[%s1417_s17 + $0xa0] sm:$0xff] %v559_v62  ;;  %747 = vst [vmem:[%s1417_s17 + $0x168] sm:$0xff] %v684_v0 }
 0x142   : > { %v563_v3 = vpop.f32.mrb[42].mxu0  ;;  %v688_v4 = vpop.f32.mrb[42].mxu1 }
 0x143   : > { %v564_v5 = vadd.f32 %v1410_v2, %v563_v3  ;;  %v1011_v6 = vpop.f32.mrb[43].mxu0  ;;  %v689_v7 = vadd.f32 %v1410_v2, %v688_v4  ;;  %v1086_v8 = vpop.f32.mrb[43].mxu1 }
 0x145   : > { %723 = vst [vmem:[%s1417_s17 + $0xa8] sm:$0xff] %v564_v5  ;;  %748 = vst [vmem:[%s1417_s17 + $0x170] sm:$0xff] %v689_v7 }
 0x146   : > { %v568_v9 = vpop.f32.mrb[44].mxu0  ;;  %v693_v10 = vpop.f32.mrb[44].mxu1 }
 0x147   : > { %v569_v11 = vadd.f32 %v1410_v2, %v568_v9  ;;  %v1014_v12 = vpop.f32.mrb[45].mxu0  ;;  %v694_v13 = vadd.f32 %v1410_v2, %v693_v10  ;;  %v1089_v14 = vpop.f32.mrb[45].mxu1 }
 0x149   : > { %724 = vst [vmem:[%s1417_s17 + $0xb0] sm:$0xff] %v569_v11  ;;  %749 = vst [vmem:[%s1417_s17 + $0x178] sm:$0xff] %v694_v13 }
 0x14a   : > { %v573_v15 = vpop.f32.mrb[46].mxu0  ;;  %v698_v16 = vpop.f32.mrb[46].mxu1 }
 0x14b   : > { %v574_v17 = vadd.f32 %v1410_v2, %v573_v15  ;;  %v1017_v18 = vpop.f32.mrb[47].mxu0  ;;  %v699_v19 = vadd.f32 %v1410_v2, %v698_v16  ;;  %v1092_v20 = vpop.f32.mrb[47].mxu1 }
 0x14d   : > { %725 = vst [vmem:[%s1417_s17 + $0xb8] sm:$0xff] %v574_v17  ;;  %750 = vst [vmem:[%s1417_s17 + $0x180] sm:$0xff] %v699_v19 }
 0x14e   : > { %v578_v21 = vpop.f32.mrb[48].mxu0 }
 0x14f   : > { %v579_v22 = vadd.f32 %v1410_v2, %v578_v21  ;;  %v1020_v23 = vpop.f32.mrb[49].mxu0 }
 0x151   : > { %726 = vst [vmem:[%s1417_s17 + $0xc0] sm:$0xff] %v579_v22 }
 0x152 PF: > { %s13_s12 = sadd.s32 1, %s1137_s12  }
 0x153   : > { %p10_p4 = scmp.ge.s32.totalorder %s13_s12, 6  }
 0x155   :  { %12 = sbr.rel (!%p10_p4) target bundleno = 1 (0x1), region = 62 }

// kernel: lenet5_forward.6
= control target key start
LH: loop header
LB: loop body
LE: loop exit
PB: predicated region body
PF: predicated region fallthrough
CT: control target
= control target key end

     0   :  { %s1173_s0 = inlined_call_operand.vmem [shape: f32[392,128], index: 0, kind: input, shape index: {}]   ;;  %s1174_s1 = inlined_call_operand.vmem [shape: f32[392,128], index: 1, kind: input, shape index: {}]   ;;  %s1175_s2 = inlined_call_operand.vmem [shape: f32[392,128], index: 2, kind: input, shape index: {}]   ;;  %s1176_s3 = inlined_call_operand.vmem [shape: f32[392,128], index: 3, kind: input, shape index: {}]   ;;  %s1177_s4 = inlined_call_operand.vmem [shape: f32[392,128], index: 4, kind: output, shape index: {}]  }
   0x1   :  { %v17_v0 = vld [vmem:[%s1173_s0] sm:$0xff]  ;;  %v18_v5 = vld [vmem:[%s1173_s0 + $0x8] sm:$0xff]  ;;  %v19_v11 = vld [vmem:[%s1173_s0 + $0x10] sm:$0xff] }
   0x2   :  { %v66_v1 = vld [vmem:[%s1174_s1] sm:$0xff]  ;;  %v67_v6 = vld [vmem:[%s1174_s1 + $0x8] sm:$0xff]  ;;  %v68_v13 = vld [vmem:[%s1174_s1 + $0x10] sm:$0xff] }
   0x3   :  { %v164_v2 = vld [vmem:[%s1175_s2] sm:$0xff]  ;;  %v115_v3 = vmax.f32 %v17_v0, %v66_v1  ;;  %v116_v8 = vmax.f32 %v18_v5, %v67_v6  ;;  %v165_v9 = vld [vmem:[%s1175_s2 + $0x8] sm:$0xff]  ;;  %v166_v14 = vld [vmem:[%s1175_s2 + $0x10] sm:$0xff]  ;;  %v117_v17 = vmax.f32 %v19_v11, %v68_v13 }
   0x4   :  { %v213_v4 = vld [vmem:[%s1176_s3] sm:$0xff]  ;;  %v214_v10 = vld [vmem:[%s1176_s3 + $0x8] sm:$0xff]  ;;  %v215_v15 = vld [vmem:[%s1176_s3 + $0x10] sm:$0xff] }
   0x5   :  { %v262_v7 = vmax.f32 %v164_v2, %v213_v4  ;;  %v263_v12 = vmax.f32 %v165_v9, %v214_v10  ;;  %v264_v18 = vmax.f32 %v166_v14, %v215_v15  ;;  %v20_v19 = vld [vmem:[%s1173_s0 + $0x18] sm:$0xff]  ;;  %v21_v25 = vld [vmem:[%s1173_s0 + $0x20] sm:$0xff]  ;;  %v22_v32 = vld [vmem:[%s1173_s0 + $0x28] sm:$0xff] }
   0x6   :  { %v69_v20 = vld [vmem:[%s1174_s1 + $0x18] sm:$0xff]  ;;  %v70_v26 = vld [vmem:[%s1174_s1 + $0x20] sm:$0xff]  ;;  %v71_v34 = vld [vmem:[%s1174_s1 + $0x28] sm:$0xff] }
   0x7   :  { %v311_v16 = vmax.f32 %v115_v3, %v262_v7  ;;  %v167_v21 = vld [vmem:[%s1175_s2 + $0x18] sm:$0xff]  ;;  %v312_v22 = vmax.f32 %v116_v8, %v263_v12  ;;  %v118_v23 = vmax.f32 %v20_v19, %v69_v20  ;;  %v313_v27 = vmax.f32 %v117_v17, %v264_v18  ;;  %v168_v30 = vld [vmem:[%s1175_s2 + $0x20] sm:$0xff]  ;;  %v169_v35 = vld [vmem:[%s1175_s2 + $0x28] sm:$0xff] }
   0x8   :  { %v216_v24 = vld [vmem:[%s1176_s3 + $0x18] sm:$0xff]  ;;  %v119_v29 = vmax.f32 %v21_v25, %v70_v26  ;;  %v217_v31 = vld [vmem:[%s1176_s3 + $0x20] sm:$0xff]  ;;  %v218_v36 = vld [vmem:[%s1176_s3 + $0x28] sm:$0xff]  ;;  %v120_v38 = vmax.f32 %v22_v32, %v71_v34 }
   0x9   :  { %360 = vst [vmem:[%s1177_s4] sm:$0xff] %v311_v16  ;;  %v265_v28 = vmax.f32 %v167_v21, %v216_v24  ;;  %361 = vst [vmem:[%s1177_s4 + $0x8] sm:$0xff] %v312_v22  ;;  %v266_v33 = vmax.f32 %v168_v30, %v217_v31  ;;  %v267_v39 = vmax.f32 %v169_v35, %v218_v36  ;;  %v23_v40 = vld [vmem:[%s1173_s0 + $0x30] sm:$0xff]  ;;  %v24_v46 = vld [vmem:[%s1173_s0 + $0x38] sm:$0xff] }
   0xa   :  { %362 = vst [vmem:[%s1177_s4 + $0x10] sm:$0xff] %v313_v27  ;;  %v72_v41 = vld [vmem:[%s1174_s1 + $0x30] sm:$0xff]  ;;  %v73_v47 = vld [vmem:[%s1174_s1 + $0x38] sm:$0xff]  ;;  %v25_v53 = vld [vmem:[%s1173_s0 + $0x40] sm:$0xff] }
   0xb   :  { %v314_v37 = vmax.f32 %v118_v23, %v265_v28  ;;  %v170_v42 = vld [vmem:[%s1175_s2 + $0x30] sm:$0xff]  ;;  %v315_v43 = vmax.f32 %v119_v29, %v266_v33  ;;  %v121_v44 = vmax.f32 %v23_v40, %v72_v41  ;;  %v316_v48 = vmax.f32 %v120_v38, %v267_v39  ;;  %v171_v51 = vld [vmem:[%s1175_s2 + $0x38] sm:$0xff]  ;;  %v74_v55 = vld [vmem:[%s1174_s1 + $0x40] sm:$0xff] }
   0xc   :  { %v219_v45 = vld [vmem:[%s1176_s3 + $0x30] sm:$0xff]  ;;  %v122_v50 = vmax.f32 %v24_v46, %v73_v47  ;;  %v220_v52 = vld [vmem:[%s1176_s3 + $0x38] sm:$0xff]  ;;  %v172_v56 = vld [vmem:[%s1175_s2 + $0x40] sm:$0xff]  ;;  %v123_v59 = vmax.f32 %v25_v53, %v74_v55 }
   0xd   :  { %363 = vst [vmem:[%s1177_s4 + $0x18] sm:$0xff] %v314_v37  ;;  %v268_v49 = vmax.f32 %v170_v42, %v219_v45  ;;  %364 = vst [vmem:[%s1177_s4 + $0x20] sm:$0xff] %v315_v43  ;;  %v269_v54 = vmax.f32 %v171_v51, %v220_v52  ;;  %v221_v57 = vld [vmem:[%s1176_s3 + $0x40] sm:$0xff]  ;;  %v26_v61 = vld [vmem:[%s1173_s0 + $0x48] sm:$0xff] }
   0xe   :  { %365 = vst [vmem:[%s1177_s4 + $0x28] sm:$0xff] %v316_v48  ;;  %v270_v60 = vmax.f32 %v172_v56, %v221_v57  ;;  %v75_v62 = vld [vmem:[%s1174_s1 + $0x48] sm:$0xff]  ;;  %v27_v3 = vld [vmem:[%s1173_s0 + $0x50] sm:$0xff]  ;;  %v28_v10 = vld [vmem:[%s1173_s0 + $0x58] sm:$0xff] }
   0xf   :  { %v317_v58 = vmax.f32 %v121_v44, %v268_v49  ;;  %v173_v63 = vld [vmem:[%s1175_s2 + $0x48] sm:$0xff]  ;;  %v318_v0 = vmax.f32 %v122_v50, %v269_v54  ;;  %v124_v1 = vmax.f32 %v26_v61, %v75_v62  ;;  %v76_v4 = vld [vmem:[%s1174_s1 + $0x50] sm:$0xff]  ;;  %v77_v12 = vld [vmem:[%s1174_s1 + $0x58] sm:$0xff] }
  0x10   :  { %v222_v2 = vld [vmem:[%s1176_s3 + $0x48] sm:$0xff]  ;;  %v319_v5 = vmax.f32 %v123_v59, %v270_v60  ;;  %v125_v7 = vmax.f32 %v27_v3, %v76_v4  ;;  %v174_v8 = vld [vmem:[%s1175_s2 + $0x50] sm:$0xff]  ;;  %v175_v13 = vld [vmem:[%s1175_s2 + $0x58] sm:$0xff]  ;;  %v126_v16 = vmax.f32 %v28_v10, %v77_v12 }
  0x11   :  { %366 = vst [vmem:[%s1177_s4 + $0x30] sm:$0xff] %v317_v58  ;;  %v271_v6 = vmax.f32 %v173_v63, %v222_v2  ;;  %v223_v9 = vld [vmem:[%s1176_s3 + $0x50] sm:$0xff]  ;;  %367 = vst [vmem:[%s1177_s4 + $0x38] sm:$0xff] %v318_v0  ;;  %v224_v14 = vld [vmem:[%s1176_s3 + $0x58] sm:$0xff] }
  0x12   :  { %v272_v11 = vmax.f32 %v174_v8, %v223_v9  ;;  %368 = vst [vmem:[%s1177_s4 + $0x40] sm:$0xff] %v319_v5  ;;  %v273_v17 = vmax.f32 %v175_v13, %v224_v14  ;;  %v29_v18 = vld [vmem:[%s1173_s0 + $0x60] sm:$0xff]  ;;  %v30_v24 = vld [vmem:[%s1173_s0 + $0x68] sm:$0xff]  ;;  %v31_v31 = vld [vmem:[%s1173_s0 + $0x70] sm:$0xff] }
  0x13   :  { %v320_v15 = vmax.f32 %v124_v1, %v271_v6  ;;  %v78_v19 = vld [vmem:[%s1174_s1 + $0x60] sm:$0xff]  ;;  %v79_v25 = vld [vmem:[%s1174_s1 + $0x68] sm:$0xff]  ;;  %v80_v33 = vld [vmem:[%s1174_s1 + $0x70] sm:$0xff] }
  0x14   :  { %v176_v20 = vld [vmem:[%s1175_s2 + $0x60] sm:$0xff]  ;;  %v321_v21 = vmax.f32 %v125_v7, %v272_v11  ;;  %v127_v22 = vmax.f32 %v29_v18, %v78_v19  ;;  %v322_v26 = vmax.f32 %v126_v16, %v273_v17  ;;  %v128_v28 = vmax.f32 %v30_v24, %v79_v25  ;;  %v177_v29 = vld [vmem:[%s1175_s2 + $0x68] sm:$0xff]  ;;  %v178_v34 = vld [vmem:[%s1175_s2 + $0x70] sm:$0xff] }
  0x15   :  { %v225_v23 = vld [vmem:[%s1176_s3 + $0x60] sm:$0xff]  ;;  %369 = vst [vmem:[%s1177_s4 + $0x48] sm:$0xff] %v320_v15  ;;  %v226_v30 = vld [vmem:[%s1176_s3 + $0x68] sm:$0xff]  ;;  %v227_v35 = vld [vmem:[%s1176_s3 + $0x70] sm:$0xff]  ;;  %v129_v37 = vmax.f32 %v31_v31, %v80_v33 }
  0x16   :  { %v274_v27 = vmax.f32 %v176_v20, %v225_v23  ;;  %370 = vst [vmem:[%s1177_s4 + $0x50] sm:$0xff] %v321_v21  ;;  %v275_v32 = vmax.f32 %v177_v29, %v226_v30  ;;  %371 = vst [vmem:[%s1177_s4 + $0x58] sm:$0xff] %v322_v26  ;;  %v276_v38 = vmax.f32 %v178_v34, %v227_v35  ;;  %v32_v39 = vld [vmem:[%s1173_s0 + $0x78] sm:$0xff]  ;;  %v33_v45 = vld [vmem:[%s1173_s0 + $0x80] sm:$0xff] }
  0x17   :  { %v81_v40 = vld [vmem:[%s1174_s1 + $0x78] sm:$0xff]  ;;  %v82_v46 = vld [vmem:[%s1174_s1 + $0x80] sm:$0xff]  ;;  %v34_v52 = vld [vmem:[%s1173_s0 + $0x88] sm:$0xff] }
  0x18   :  { %v323_v36 = vmax.f32 %v127_v22, %v274_v27  ;;  %v179_v41 = vld [vmem:[%s1175_s2 + $0x78] sm:$0xff]  ;;  %v324_v42 = vmax.f32 %v128_v28, %v275_v32  ;;  %v130_v43 = vmax.f32 %v32_v39, %v81_v40  ;;  %v325_v47 = vmax.f32 %v129_v37, %v276_v38  ;;  %v180_v50 = vld [vmem:[%s1175_s2 + $0x80] sm:$0xff]  ;;  %v83_v54 = vld [vmem:[%s1174_s1 + $0x88] sm:$0xff] }
  0x19   :  { %v228_v44 = vld [vmem:[%s1176_s3 + $0x78] sm:$0xff]  ;;  %v131_v49 = vmax.f32 %v33_v45, %v82_v46  ;;  %v229_v51 = vld [vmem:[%s1176_s3 + $0x80] sm:$0xff]  ;;  %v181_v55 = vld [vmem:[%s1175_s2 + $0x88] sm:$0xff]  ;;  %v132_v58 = vmax.f32 %v34_v52, %v83_v54 }
  0x1a   :  { %372 = vst [vmem:[%s1177_s4 + $0x60] sm:$0xff] %v323_v36  ;;  %v277_v48 = vmax.f32 %v179_v41, %v228_v44  ;;  %373 = vst [vmem:[%s1177_s4 + $0x68] sm:$0xff] %v324_v42  ;;  %v278_v53 = vmax.f32 %v180_v50, %v229_v51  ;;  %v230_v56 = vld [vmem:[%s1176_s3 + $0x88] sm:$0xff]  ;;  %v35_v60 = vld [vmem:[%s1173_s0 + $0x90] sm:$0xff] }
  0x1b   :  { %374 = vst [vmem:[%s1177_s4 + $0x70] sm:$0xff] %v325_v47  ;;  %v279_v59 = vmax.f32 %v181_v55, %v230_v56  ;;  %v84_v61 = vld [vmem:[%s1174_s1 + $0x90] sm:$0xff]  ;;  %v36_v2 = vld [vmem:[%s1173_s0 + $0x98] sm:$0xff]  ;;  %v37_v9 = vld [vmem:[%s1173_s0 + $0xa0] sm:$0xff] }
  0x1c   :  { %v326_v57 = vmax.f32 %v130_v43, %v277_v48  ;;  %v182_v62 = vld [vmem:[%s1175_s2 + $0x90] sm:$0xff]  ;;  %v327_v63 = vmax.f32 %v131_v49, %v278_v53  ;;  %v133_v0 = vmax.f32 %v35_v60, %v84_v61  ;;  %v85_v3 = vld [vmem:[%s1174_s1 + $0x98] sm:$0xff]  ;;  %v86_v11 = vld [vmem:[%s1174_s1 + $0xa0] sm:$0xff] }
  0x1d   :  { %v231_v1 = vld [vmem:[%s1176_s3 + $0x90] sm:$0xff]  ;;  %v328_v4 = vmax.f32 %v132_v58, %v279_v59  ;;  %v134_v6 = vmax.f32 %v36_v2, %v85_v3  ;;  %v183_v7 = vld [vmem:[%s1175_s2 + $0x98] sm:$0xff]  ;;  %v184_v12 = vld [vmem:[%s1175_s2 + $0xa0] sm:$0xff]  ;;  %v135_v15 = vmax.f32 %v37_v9, %v86_v11 }
  0x1e   :  { %375 = vst [vmem:[%s1177_s4 + $0x78] sm:$0xff] %v326_v57  ;;  %v280_v5 = vmax.f32 %v182_v62, %v231_v1  ;;  %v232_v8 = vld [vmem:[%s1176_s3 + $0x98] sm:$0xff]  ;;  %376 = vst [vmem:[%s1177_s4 + $0x80] sm:$0xff] %v327_v63  ;;  %v233_v13 = vld [vmem:[%s1176_s3 + $0xa0] sm:$0xff] }
  0x1f   :  { %v281_v10 = vmax.f32 %v183_v7, %v232_v8  ;;  %377 = vst [vmem:[%s1177_s4 + $0x88] sm:$0xff] %v328_v4  ;;  %v282_v16 = vmax.f32 %v184_v12, %v233_v13  ;;  %v38_v17 = vld [vmem:[%s1173_s0 + $0xa8] sm:$0xff]  ;;  %v39_v23 = vld [vmem:[%s1173_s0 + $0xb0] sm:$0xff]  ;;  %v40_v30 = vld [vmem:[%s1173_s0 + $0xb8] sm:$0xff] }
  0x20   :  { %v329_v14 = vmax.f32 %v133_v0, %v280_v5  ;;  %v87_v18 = vld [vmem:[%s1174_s1 + $0xa8] sm:$0xff]  ;;  %v88_v24 = vld [vmem:[%s1174_s1 + $0xb0] sm:$0xff]  ;;  %v89_v32 = vld [vmem:[%s1174_s1 + $0xb8] sm:$0xff] }
  0x21   :  { %v185_v19 = vld [vmem:[%s1175_s2 + $0xa8] sm:$0xff]  ;;  %v330_v20 = vmax.f32 %v134_v6, %v281_v10  ;;  %v136_v21 = vmax.f32 %v38_v17, %v87_v18  ;;  %v331_v25 = vmax.f32 %v135_v15, %v282_v16  ;;  %v137_v27 = vmax.f32 %v39_v23, %v88_v24  ;;  %v186_v28 = vld [vmem:[%s1175_s2 + $0xb0] sm:$0xff]  ;;  %v187_v33 = vld [vmem:[%s1175_s2 + $0xb8] sm:$0xff] }
  0x22   :  { %v234_v22 = vld [vmem:[%s1176_s3 + $0xa8] sm:$0xff]  ;;  %378 = vst [vmem:[%s1177_s4 + $0x90] sm:$0xff] %v329_v14  ;;  %v235_v29 = vld [vmem:[%s1176_s3 + $0xb0] sm:$0xff]  ;;  %v236_v34 = vld [vmem:[%s1176_s3 + $0xb8] sm:$0xff]  ;;  %v138_v36 = vmax.f32 %v40_v30, %v89_v32 }
  0x23   :  { %v283_v26 = vmax.f32 %v185_v19, %v234_v22  ;;  %379 = vst [vmem:[%s1177_s4 + $0x98] sm:$0xff] %v330_v20  ;;  %v284_v31 = vmax.f32 %v186_v28, %v235_v29  ;;  %380 = vst [vmem:[%s1177_s4 + $0xa0] sm:$0xff] %v331_v25  ;;  %v285_v37 = vmax.f32 %v187_v33, %v236_v34  ;;  %v41_v38 = vld [vmem:[%s1173_s0 + $0xc0] sm:$0xff]  ;;  %v42_v44 = vld [vmem:[%s1173_s0 + $0xc8] sm:$0xff] }
  0x24   :  { %v90_v39 = vld [vmem:[%s1174_s1 + $0xc0] sm:$0xff]  ;;  %v91_v45 = vld [vmem:[%s1174_s1 + $0xc8] sm:$0xff]  ;;  %v43_v51 = vld [vmem:[%s1173_s0 + $0xd0] sm:$0xff] }
  0x25   :  { %v332_v35 = vmax.f32 %v136_v21, %v283_v26  ;;  %v188_v40 = vld [vmem:[%s1175_s2 + $0xc0] sm:$0xff]  ;;  %v333_v41 = vmax.f32 %v137_v27, %v284_v31  ;;  %v139_v42 = vmax.f32 %v41_v38, %v90_v39  ;;  %v334_v46 = vmax.f32 %v138_v36, %v285_v37  ;;  %v189_v49 = vld [vmem:[%s1175_s2 + $0xc8] sm:$0xff]  ;;  %v92_v53 = vld [vmem:[%s1174_s1 + $0xd0] sm:$0xff] }
  0x26   :  { %v237_v43 = vld [vmem:[%s1176_s3 + $0xc0] sm:$0xff]  ;;  %v140_v48 = vmax.f32 %v42_v44, %v91_v45  ;;  %v238_v50 = vld [vmem:[%s1176_s3 + $0xc8] sm:$0xff]  ;;  %v190_v54 = vld [vmem:[%s1175_s2 + $0xd0] sm:$0xff]  ;;  %v141_v57 = vmax.f32 %v43_v51, %v92_v53 }
  0x27   :  { %381 = vst [vmem:[%s1177_s4 + $0xa8] sm:$0xff] %v332_v35  ;;  %v286_v47 = vmax.f32 %v188_v40, %v237_v43  ;;  %382 = vst [vmem:[%s1177_s4 + $0xb0] sm:$0xff] %v333_v41  ;;  %v287_v52 = vmax.f32 %v189_v49, %v238_v50  ;;  %v239_v55 = vld [vmem:[%s1176_s3 + $0xd0] sm:$0xff]  ;;  %v44_v59 = vld [vmem:[%s1173_s0 + $0xd8] sm:$0xff] }
  0x28   :  { %383 = vst [vmem:[%s1177_s4 + $0xb8] sm:$0xff] %v334_v46  ;;  %v288_v58 = vmax.f32 %v190_v54, %v239_v55  ;;  %v93_v60 = vld [vmem:[%s1174_s1 + $0xd8] sm:$0xff]  ;;  %v45_v1 = vld [vmem:[%s1173_s0 + $0xe0] sm:$0xff]  ;;  %v46_v8 = vld [vmem:[%s1173_s0 + $0xe8] sm:$0xff] }
  0x29   :  { %v335_v56 = vmax.f32 %v139_v42, %v286_v47  ;;  %v191_v61 = vld [vmem:[%s1175_s2 + $0xd8] sm:$0xff]  ;;  %v336_v62 = vmax.f32 %v140_v48, %v287_v52  ;;  %v142_v63 = vmax.f32 %v44_v59, %v93_v60  ;;  %v94_v2 = vld [vmem:[%s1174_s1 + $0xe0] sm:$0xff]  ;;  %v95_v10 = vld [vmem:[%s1174_s1 + $0xe8] sm:$0xff] }
  0x2a   :  { %v240_v0 = vld [vmem:[%s1176_s3 + $0xd8] sm:$0xff]  ;;  %v337_v3 = vmax.f32 %v141_v57, %v288_v58  ;;  %v143_v5 = vmax.f32 %v45_v1, %v94_v2  ;;  %v192_v6 = vld [vmem:[%s1175_s2 + $0xe0] sm:$0xff]  ;;  %v193_v11 = vld [vmem:[%s1175_s2 + $0xe8] sm:$0xff]  ;;  %v144_v14 = vmax.f32 %v46_v8, %v95_v10 }
  0x2b   :  { %384 = vst [vmem:[%s1177_s4 + $0xc0] sm:$0xff] %v335_v56  ;;  %v289_v4 = vmax.f32 %v191_v61, %v240_v0  ;;  %v241_v7 = vld [vmem:[%s1176_s3 + $0xe0] sm:$0xff]  ;;  %385 = vst [vmem:[%s1177_s4 + $0xc8] sm:$0xff] %v336_v62  ;;  %v242_v12 = vld [vmem:[%s1176_s3 + $0xe8] sm:$0xff] }
  0x2c   :  { %v290_v9 = vmax.f32 %v192_v6, %v241_v7  ;;  %386 = vst [vmem:[%s1177_s4 + $0xd0] sm:$0xff] %v337_v3  ;;  %v291_v15 = vmax.f32 %v193_v11, %v242_v12  ;;  %v47_v16 = vld [vmem:[%s1173_s0 + $0xf0] sm:$0xff]  ;;  %v48_v22 = vld [vmem:[%s1173_s0 + $0xf8] sm:$0xff]  ;;  %v49_v29 = vld [vmem:[%s1173_s0 + $0x100] sm:$0xff] }
  0x2d   :  { %v338_v13 = vmax.f32 %v142_v63, %v289_v4  ;;  %v96_v17 = vld [vmem:[%s1174_s1 + $0xf0] sm:$0xff]  ;;  %v97_v23 = vld [vmem:[%s1174_s1 + $0xf8] sm:$0xff]  ;;  %v98_v31 = vld [vmem:[%s1174_s1 + $0x100] sm:$0xff] }
  0x2e   :  { %v194_v18 = vld [vmem:[%s1175_s2 + $0xf0] sm:$0xff]  ;;  %v339_v19 = vmax.f32 %v143_v5, %v290_v9  ;;  %v145_v20 = vmax.f32 %v47_v16, %v96_v17  ;;  %v340_v24 = vmax.f32 %v144_v14, %v291_v15  ;;  %v146_v26 = vmax.f32 %v48_v22, %v97_v23  ;;  %v195_v27 = vld [vmem:[%s1175_s2 + $0xf8] sm:$0xff]  ;;  %v196_v32 = vld [vmem:[%s1175_s2 + $0x100] sm:$0xff] }
  0x2f   :  { %v243_v21 = vld [vmem:[%s1176_s3 + $0xf0] sm:$0xff]  ;;  %387 = vst [vmem:[%s1177_s4 + $0xd8] sm:$0xff] %v338_v13  ;;  %v244_v28 = vld [vmem:[%s1176_s3 + $0xf8] sm:$0xff]  ;;  %v245_v33 = vld [vmem:[%s1176_s3 + $0x100] sm:$0xff]  ;;  %v147_v35 = vmax.f32 %v49_v29, %v98_v31 }
  0x30   :  { %v292_v25 = vmax.f32 %v194_v18, %v243_v21  ;;  %388 = vst [vmem:[%s1177_s4 + $0xe0] sm:$0xff] %v339_v19  ;;  %v293_v30 = vmax.f32 %v195_v27, %v244_v28  ;;  %389 = vst [vmem:[%s1177_s4 + $0xe8] sm:$0xff] %v340_v24  ;;  %v294_v36 = vmax.f32 %v196_v32, %v245_v33  ;;  %v50_v37 = vld [vmem:[%s1173_s0 + $0x108] sm:$0xff]  ;;  %v51_v43 = vld [vmem:[%s1173_s0 + $0x110] sm:$0xff] }
  0x31   :  { %v99_v38 = vld [vmem:[%s1174_s1 + $0x108] sm:$0xff]  ;;  %v100_v44 = vld [vmem:[%s1174_s1 + $0x110] sm:$0xff]  ;;  %v52_v50 = vld [vmem:[%s1173_s0 + $0x118] sm:$0xff] }
  0x32   :  { %v341_v34 = vmax.f32 %v145_v20, %v292_v25  ;;  %v197_v39 = vld [vmem:[%s1175_s2 + $0x108] sm:$0xff]  ;;  %v342_v40 = vmax.f32 %v146_v26, %v293_v30  ;;  %v148_v41 = vmax.f32 %v50_v37, %v99_v38  ;;  %v343_v45 = vmax.f32 %v147_v35, %v294_v36  ;;  %v198_v48 = vld [vmem:[%s1175_s2 + $0x110] sm:$0xff]  ;;  %v101_v52 = vld [vmem:[%s1174_s1 + $0x118] sm:$0xff] }
  0x33   :  { %v246_v42 = vld [vmem:[%s1176_s3 + $0x108] sm:$0xff]  ;;  %v149_v47 = vmax.f32 %v51_v43, %v100_v44  ;;  %v247_v49 = vld [vmem:[%s1176_s3 + $0x110] sm:$0xff]  ;;  %v199_v53 = vld [vmem:[%s1175_s2 + $0x118] sm:$0xff]  ;;  %v150_v56 = vmax.f32 %v52_v50, %v101_v52 }
  0x34   :  { %390 = vst [vmem:[%s1177_s4 + $0xf0] sm:$0xff] %v341_v34  ;;  %v295_v46 = vmax.f32 %v197_v39, %v246_v42  ;;  %391 = vst [vmem:[%s1177_s4 + $0xf8] sm:$0xff] %v342_v40  ;;  %v296_v51 = vmax.f32 %v198_v48, %v247_v49  ;;  %v248_v54 = vld [vmem:[%s1176_s3 + $0x118] sm:$0xff]  ;;  %v53_v58 = vld [vmem:[%s1173_s0 + $0x120] sm:$0xff] }
  0x35   :  { %392 = vst [vmem:[%s1177_s4 + $0x100] sm:$0xff] %v343_v45  ;;  %v297_v57 = vmax.f32 %v199_v53, %v248_v54  ;;  %v102_v59 = vld [vmem:[%s1174_s1 + $0x120] sm:$0xff]  ;;  %v54_v0 = vld [vmem:[%s1173_s0 + $0x128] sm:$0xff]  ;;  %v55_v7 = vld [vmem:[%s1173_s0 + $0x130] sm:$0xff] }
  0x36   :  { %v344_v55 = vmax.f32 %v148_v41, %v295_v46  ;;  %v200_v60 = vld [vmem:[%s1175_s2 + $0x120] sm:$0xff]  ;;  %v345_v61 = vmax.f32 %v149_v47, %v296_v51  ;;  %v151_v62 = vmax.f32 %v53_v58, %v102_v59  ;;  %v103_v1 = vld [vmem:[%s1174_s1 + $0x128] sm:$0xff]  ;;  %v104_v9 = vld [vmem:[%s1174_s1 + $0x130] sm:$0xff] }
  0x37   :  { %v249_v63 = vld [vmem:[%s1176_s3 + $0x120] sm:$0xff]  ;;  %v346_v2 = vmax.f32 %v150_v56, %v297_v57  ;;  %v152_v4 = vmax.f32 %v54_v0, %v103_v1  ;;  %v201_v5 = vld [vmem:[%s1175_s2 + $0x128] sm:$0xff]  ;;  %v202_v10 = vld [vmem:[%s1175_s2 + $0x130] sm:$0xff]  ;;  %v153_v13 = vmax.f32 %v55_v7, %v104_v9 }
  0x38   :  { %393 = vst [vmem:[%s1177_s4 + $0x108] sm:$0xff] %v344_v55  ;;  %v298_v3 = vmax.f32 %v200_v60, %v249_v63  ;;  %v250_v6 = vld [vmem:[%s1176_s3 + $0x128] sm:$0xff]  ;;  %394 = vst [vmem:[%s1177_s4 + $0x110] sm:$0xff] %v345_v61  ;;  %v251_v11 = vld [vmem:[%s1176_s3 + $0x130] sm:$0xff] }
  0x39   :  { %v299_v8 = vmax.f32 %v201_v5, %v250_v6  ;;  %395 = vst [vmem:[%s1177_s4 + $0x118] sm:$0xff] %v346_v2  ;;  %v300_v14 = vmax.f32 %v202_v10, %v251_v11  ;;  %v56_v15 = vld [vmem:[%s1173_s0 + $0x138] sm:$0xff]  ;;  %v57_v21 = vld [vmem:[%s1173_s0 + $0x140] sm:$0xff]  ;;  %v58_v28 = vld [vmem:[%s1173_s0 + $0x148] sm:$0xff] }
  0x3a   :  { %v347_v12 = vmax.f32 %v151_v62, %v298_v3  ;;  %v105_v16 = vld [vmem:[%s1174_s1 + $0x138] sm:$0xff]  ;;  %v106_v22 = vld [vmem:[%s1174_s1 + $0x140] sm:$0xff]  ;;  %v107_v30 = vld [vmem:[%s1174_s1 + $0x148] sm:$0xff] }
  0x3b   :  { %v203_v17 = vld [vmem:[%s1175_s2 + $0x138] sm:$0xff]  ;;  %v348_v18 = vmax.f32 %v152_v4, %v299_v8  ;;  %v154_v19 = vmax.f32 %v56_v15, %v105_v16  ;;  %v349_v23 = vmax.f32 %v153_v13, %v300_v14  ;;  %v155_v25 = vmax.f32 %v57_v21, %v106_v22  ;;  %v204_v26 = vld [vmem:[%s1175_s2 + $0x140] sm:$0xff]  ;;  %v205_v31 = vld [vmem:[%s1175_s2 + $0x148] sm:$0xff] }
  0x3c   :  { %v252_v20 = vld [vmem:[%s1176_s3 + $0x138] sm:$0xff]  ;;  %396 = vst [vmem:[%s1177_s4 + $0x120] sm:$0xff] %v347_v12  ;;  %v253_v27 = vld [vmem:[%s1176_s3 + $0x140] sm:$0xff]  ;;  %v254_v32 = vld [vmem:[%s1176_s3 + $0x148] sm:$0xff]  ;;  %v156_v34 = vmax.f32 %v58_v28, %v107_v30 }
  0x3d   :  { %v301_v24 = vmax.f32 %v203_v17, %v252_v20  ;;  %397 = vst [vmem:[%s1177_s4 + $0x128] sm:$0xff] %v348_v18  ;;  %v302_v29 = vmax.f32 %v204_v26, %v253_v27  ;;  %398 = vst [vmem:[%s1177_s4 + $0x130] sm:$0xff] %v349_v23  ;;  %v303_v35 = vmax.f32 %v205_v31, %v254_v32  ;;  %v59_v36 = vld [vmem:[%s1173_s0 + $0x150] sm:$0xff]  ;;  %v60_v42 = vld [vmem:[%s1173_s0 + $0x158] sm:$0xff] }
  0x3e   :  { %v108_v37 = vld [vmem:[%s1174_s1 + $0x150] sm:$0xff]  ;;  %v109_v43 = vld [vmem:[%s1174_s1 + $0x158] sm:$0xff]  ;;  %v61_v49 = vld [vmem:[%s1173_s0 + $0x160] sm:$0xff] }
  0x3f   :  { %v350_v33 = vmax.f32 %v154_v19, %v301_v24  ;;  %v206_v38 = vld [vmem:[%s1175_s2 + $0x150] sm:$0xff]  ;;  %v351_v39 = vmax.f32 %v155_v25, %v302_v29  ;;  %v157_v40 = vmax.f32 %v59_v36, %v108_v37  ;;  %v352_v44 = vmax.f32 %v156_v34, %v303_v35  ;;  %v207_v47 = vld [vmem:[%s1175_s2 + $0x158] sm:$0xff]  ;;  %v110_v51 = vld [vmem:[%s1174_s1 + $0x160] sm:$0xff] }
  0x40   :  { %v255_v41 = vld [vmem:[%s1176_s3 + $0x150] sm:$0xff]  ;;  %v158_v46 = vmax.f32 %v60_v42, %v109_v43  ;;  %v256_v48 = vld [vmem:[%s1176_s3 + $0x158] sm:$0xff]  ;;  %v208_v52 = vld [vmem:[%s1175_s2 + $0x160] sm:$0xff]  ;;  %v159_v55 = vmax.f32 %v61_v49, %v110_v51 }
  0x41   :  { %399 = vst [vmem:[%s1177_s4 + $0x138] sm:$0xff] %v350_v33  ;;  %v304_v45 = vmax.f32 %v206_v38, %v255_v41  ;;  %400 = vst [vmem:[%s1177_s4 + $0x140] sm:$0xff] %v351_v39  ;;  %v305_v50 = vmax.f32 %v207_v47, %v256_v48  ;;  %v257_v53 = vld [vmem:[%s1176_s3 + $0x160] sm:$0xff]  ;;  %v62_v57 = vld [vmem:[%s1173_s0 + $0x168] sm:$0xff] }
  0x42   :  { %401 = vst [vmem:[%s1177_s4 + $0x148] sm:$0xff] %v352_v44  ;;  %v306_v56 = vmax.f32 %v208_v52, %v257_v53  ;;  %v111_v58 = vld [vmem:[%s1174_s1 + $0x168] sm:$0xff]  ;;  %v63_v63 = vld [vmem:[%s1173_s0 + $0x170] sm:$0xff]  ;;  %v64_v6 = vld [vmem:[%s1173_s0 + $0x178] sm:$0xff] }
  0x43   :  { %v353_v54 = vmax.f32 %v157_v40, %v304_v45  ;;  %v209_v59 = vld [vmem:[%s1175_s2 + $0x168] sm:$0xff]  ;;  %v354_v60 = vmax.f32 %v158_v46, %v305_v50  ;;  %v160_v61 = vmax.f32 %v62_v57, %v111_v58  ;;  %v112_v0 = vld [vmem:[%s1174_s1 + $0x170] sm:$0xff]  ;;  %v113_v8 = vld [vmem:[%s1174_s1 + $0x178] sm:$0xff] }
  0x44   :  { %v258_v62 = vld [vmem:[%s1176_s3 + $0x168] sm:$0xff]  ;;  %v355_v1 = vmax.f32 %v159_v55, %v306_v56  ;;  %v161_v3 = vmax.f32 %v63_v63, %v112_v0  ;;  %v210_v4 = vld [vmem:[%s1175_s2 + $0x170] sm:$0xff]  ;;  %v211_v9 = vld [vmem:[%s1175_s2 + $0x178] sm:$0xff]  ;;  %v162_v12 = vmax.f32 %v64_v6, %v113_v8 }
  0x45   :  { %402 = vst [vmem:[%s1177_s4 + $0x150] sm:$0xff] %v353_v54  ;;  %v307_v2 = vmax.f32 %v209_v59, %v258_v62  ;;  %v259_v5 = vld [vmem:[%s1176_s3 + $0x170] sm:$0xff]  ;;  %403 = vst [vmem:[%s1177_s4 + $0x158] sm:$0xff] %v354_v60  ;;  %v260_v10 = vld [vmem:[%s1176_s3 + $0x178] sm:$0xff] }
  0x46   :  { %v308_v7 = vmax.f32 %v210_v4, %v259_v5  ;;  %404 = vst [vmem:[%s1177_s4 + $0x160] sm:$0xff] %v355_v1  ;;  %v309_v13 = vmax.f32 %v211_v9, %v260_v10  ;;  %v65_v14 = vld [vmem:[%s1173_s0 + $0x180] sm:$0xff] }
  0x47   :  { %v356_v11 = vmax.f32 %v160_v61, %v307_v2  ;;  %v114_v15 = vld [vmem:[%s1174_s1 + $0x180] sm:$0xff] }
  0x48   :  { %v212_v16 = vld [vmem:[%s1175_s2 + $0x180] sm:$0xff]  ;;  %v357_v17 = vmax.f32 %v161_v3, %v308_v7  ;;  %v163_v18 = vmax.f32 %v65_v14, %v114_v15  ;;  %v358_v20 = vmax.f32 %v162_v12, %v309_v13 }
  0x49   :  { %v261_v19 = vld [vmem:[%s1176_s3 + $0x180] sm:$0xff]  ;;  %405 = vst [vmem:[%s1177_s4 + $0x168] sm:$0xff] %v356_v11 }
  0x4a   :  { %v310_v21 = vmax.f32 %v212_v16, %v261_v19  ;;  %406 = vst [vmem:[%s1177_s4 + $0x170] sm:$0xff] %v357_v17  ;;  %407 = vst [vmem:[%s1177_s4 + $0x178] sm:$0xff] %v358_v20 }
  0x4c   :  { %v359_v22 = vmax.f32 %v163_v18, %v310_v21 }
  0x4e   :  { %408 = vst [vmem:[%s1177_s4 + $0x180] sm:$0xff] %v359_v22 }

// kernel: lenet5_forward.7
= control target key start
LH: loop header
LB: loop body
LE: loop exit
PB: predicated region body
PF: predicated region fallthrough
CT: control target
= control target key end

     0   :  { %v808_v0 = vmov 0.0|0.0   ;;  %vm171_vm0 = vcmask 130048   ;;  %s1434_s1 = inlined_call_operand.vmem [shape: f32[400,128], index: 1, kind: input, shape index: {}]   ;;  %s1435_s0 = inlined_call_operand.vmem [shape: f32[200,400], index: 0, kind: input, shape index: {}]   ;;  %s1436_s2 = inlined_call_operand.vmem [shape: f32[1,128], index: 2, kind: input, shape index: {}]   ;;  %s1437_s3 = inlined_call_operand.vmem [shape: f32[200,128], index: 3, kind: output, shape index: {}]  }
   0x1   :  { %682 = vmatprep.subr.bf16.mxu1 %v808_v0  ;;  %v114_v1 = vld [vmem:[%s1434_s1] sm:$0xff]  ;;  %v115_v2 = vld [vmem:[%s1434_s1 + $0x8] sm:$0xff]  ;;  %v116_v3 = vld [vmem:[%s1434_s1 + $0x10] sm:$0xff]  ;;  %730 = vmatprep.subr.bf16.mxu0 %v808_v0 }
   0x2   :  { %v683_v4 = vpack.c.bf16 %v115_v2, %v114_v1  ;;  %v117_v5 = vld [vmem:[%s1434_s1 + $0x18] sm:$0xff]  ;;  %v118_v7 = vld [vmem:[%s1434_s1 + $0x20] sm:$0xff]  ;;  %v119_v8 = vld [vmem:[%s1434_s1 + $0x28] sm:$0xff] }
   0x3   :  { %v686_v6 = vpack.c.bf16 %v117_v5, %v116_v3  ;;  %v146_v9 = vld [vmem:[%s1434_s1 + $0x100] sm:$0xff]  ;;  %v147_v10 = vld [vmem:[%s1434_s1 + $0x108] sm:$0xff]  ;;  %v148_v12 = vld [vmem:[%s1434_s1 + $0x110] sm:$0xff]  ;;  %v689_v13 = vpack.c.bf16 %v119_v8, %v118_v7 }
   0x4   :  { %684 = vmatpush1.bf16.msra.mxu1 %v683_v4  ;;  %v731_v11 = vpack.c.bf16 %v147_v10, %v146_v9  ;;  %v149_v14 = vld [vmem:[%s1434_s1 + $0x118] sm:$0xff]  ;;  %v120_v15 = vld [vmem:[%s1434_s1 + $0x30] sm:$0xff]  ;;  %v150_v18 = vld [vmem:[%s1434_s1 + $0x120] sm:$0xff] }
   0x5   :  { %685 = vmatprep.subr.bf16.mxu1 %v808_v0  ;;  %v121_v16 = vld [vmem:[%s1434_s1 + $0x38] sm:$0xff]  ;;  %v734_v17 = vpack.c.bf16 %v149_v14, %v148_v12  ;;  %v151_v19 = vld [vmem:[%s1434_s1 + $0x128] sm:$0xff]  ;;  %v122_v21 = vld [vmem:[%s1434_s1 + $0x40] sm:$0xff] }
   0x6   :  { %732 = vmatpush1.bf16.msra.mxu0 %v731_v11  ;;  %v692_v20 = vpack.c.bf16 %v121_v16, %v120_v15  ;;  %v123_v22 = vld [vmem:[%s1434_s1 + $0x48] sm:$0xff]  ;;  %v737_v23 = vpack.c.bf16 %v151_v19, %v150_v18  ;;  %v152_v24 = vld [vmem:[%s1434_s1 + $0x130] sm:$0xff]  ;;  %v153_v25 = vld [vmem:[%s1434_s1 + $0x138] sm:$0xff] }
   0x7   :  { %733 = vmatprep.subr.bf16.mxu0 %v808_v0  ;;  %v695_v26 = vpack.c.bf16 %v123_v22, %v122_v21  ;;  %v124_v27 = vld [vmem:[%s1434_s1 + $0x50] sm:$0xff]  ;;  %v125_v28 = vld [vmem:[%s1434_s1 + $0x58] sm:$0xff]  ;;  %v740_v29 = vpack.c.bf16 %v153_v25, %v152_v24  ;;  %v15_v30 = vld [vmem:[%s1435_s0 + $0x8] sm:$0xff] }
   0x8   :  { %687 = vmatpush1.bf16.msra.mxu1 %v686_v6  ;;  %v154_v31 = vld [vmem:[%s1434_s1 + $0x140] sm:$0xff]  ;;  %v155_v32 = vld [vmem:[%s1434_s1 + $0x148] sm:$0xff]  ;;  %311 = vmatprep.mubr.f32.mxu1 %v15_v30  ;;  %v17_v33 = vld [vmem:[%s1435_s0 + $0x18] sm:$0xff]  ;;  %v698_v34 = vpack.c.bf16 %v125_v28, %v124_v27 }
   0x9   :  { %688 = vmatprep.subr.bf16.mxu1 %v808_v0  ;;  %657 = vmatprep.mubr.msk.f32.mxu0 %vm171_vm0, %v17_v33  ;;  %v126_v35 = vld [vmem:[%s1434_s1 + $0x60] sm:$0xff]  ;;  %v127_v36 = vld [vmem:[%s1434_s1 + $0x68] sm:$0xff]  ;;  %v743_v37 = vpack.c.bf16 %v155_v32, %v154_v31  ;;  %v156_v38 = vld [vmem:[%s1434_s1 + $0x150] sm:$0xff] }
   0xa   :  { %735 = vmatpush1.bf16.msra.mxu0 %v734_v17  ;;  %v157_v39 = vld [vmem:[%s1434_s1 + $0x158] sm:$0xff]  ;;  %v701_v40 = vpack.c.bf16 %v127_v36, %v126_v35  ;;  %v128_v41 = vld [vmem:[%s1434_s1 + $0x70] sm:$0xff]  ;;  %v158_v44 = vld [vmem:[%s1434_s1 + $0x160] sm:$0xff] }
   0xb   :  { %736 = vmatprep.subr.bf16.mxu0 %v808_v0  ;;  %v129_v42 = vld [vmem:[%s1434_s1 + $0x78] sm:$0xff]  ;;  %v746_v43 = vpack.c.bf16 %v157_v39, %v156_v38  ;;  %v159_v45 = vld [vmem:[%s1434_s1 + $0x168] sm:$0xff]  ;;  %v130_v47 = vld [vmem:[%s1434_s1 + $0x80] sm:$0xff] }
   0xc   :  { %690 = vmatpush1.bf16.msra.mxu1 %v689_v13  ;;  %v704_v46 = vpack.c.bf16 %v129_v42, %v128_v41  ;;  %v131_v48 = vld [vmem:[%s1434_s1 + $0x88] sm:$0xff]  ;;  %v749_v49 = vpack.c.bf16 %v159_v45, %v158_v44  ;;  %v160_v50 = vld [vmem:[%s1434_s1 + $0x170] sm:$0xff]  ;;  %v161_v51 = vld [vmem:[%s1434_s1 + $0x178] sm:$0xff] }
   0xd   :  { %691 = vmatprep.subr.bf16.mxu1 %v808_v0  ;;  %v707_v52 = vpack.c.bf16 %v131_v48, %v130_v47  ;;  %v132_v53 = vld [vmem:[%s1434_s1 + $0x90] sm:$0xff]  ;;  %v133_v54 = vld [vmem:[%s1434_s1 + $0x98] sm:$0xff]  ;;  %v752_v55 = vpack.c.bf16 %v161_v51, %v160_v50  ;;  %v162_v56 = vld [vmem:[%s1434_s1 + $0x180] sm:$0xff] }
   0xe   :  { %738 = vmatpush1.bf16.msra.mxu0 %v737_v23  ;;  %v163_v57 = vld [vmem:[%s1434_s1 + $0x188] sm:$0xff]  ;;  %v710_v58 = vpack.c.bf16 %v133_v54, %v132_v53  ;;  %v134_v59 = vld [vmem:[%s1434_s1 + $0xa0] sm:$0xff]  ;;  %v136_v63 = vld [vmem:[%s1434_s1 + $0xb0] sm:$0xff] }
   0xf   :  { %739 = vmatprep.subr.bf16.mxu0 %v808_v0  ;;  %v135_v60 = vld [vmem:[%s1434_s1 + $0xa8] sm:$0xff]  ;;  %v755_v61 = vpack.c.bf16 %v163_v57, %v162_v56  ;;  %v137_v1 = vld [vmem:[%s1434_s1 + $0xb8] sm:$0xff]  ;;  %v16_v2 = vld [vmem:[%s1435_s0 + $0x10] sm:$0xff] }
  0x10   :  { %693 = vmatpush1.bf16.msra.mxu1 %v692_v20  ;;  %v713_v62 = vpack.c.bf16 %v135_v60, %v134_v59  ;;  %v21_v3 = vld [vmem:[%s1435_s0 + $0x38] sm:$0xff]  ;;  %v716_v4 = vpack.c.bf16 %v137_v1, %v136_v63  ;;  %v138_v5 = vld [vmem:[%s1434_s1 + $0xc0] sm:$0xff]  ;;  %v139_v6 = vld [vmem:[%s1434_s1 + $0xc8] sm:$0xff] }
  0x11   :  { %694 = vmatprep.subr.bf16.mxu1 %v808_v0  ;;  %v20_v7 = vld [vmem:[%s1435_s0 + $0x30] sm:$0xff]  ;;  %v25_v8 = vld [vmem:[%s1435_s0 + $0x58] sm:$0xff]  ;;  %v719_v9 = vpack.c.bf16 %v139_v6, %v138_v5  ;;  %v142_v15 = vld [vmem:[%s1434_s1 + $0xe0] sm:$0xff] }
  0x12   :  { %741 = vmatpush1.bf16.msra.mxu0 %v740_v29  ;;  %v140_v10 = vld [vmem:[%s1434_s1 + $0xd0] sm:$0xff]  ;;  %v141_v11 = vld [vmem:[%s1434_s1 + $0xd8] sm:$0xff]  ;;  %v143_v16 = vld [vmem:[%s1434_s1 + $0xe8] sm:$0xff] }
  0x13   :  { %742 = vmatprep.subr.bf16.mxu0 %v808_v0  ;;  %v24_v12 = vld [vmem:[%s1435_s0 + $0x50] sm:$0xff]  ;;  %v29_v13 = vld [vmem:[%s1435_s0 + $0x78] sm:$0xff]  ;;  %v722_v14 = vpack.c.bf16 %v141_v11, %v140_v10  ;;  %v725_v19 = vpack.c.bf16 %v143_v16, %v142_v15  ;;  %v14_v27 = vld [vmem:[%s1435_s0] sm:$0xff] }
  0x14   :  { %696 = vmatpush1.bf16.msra.mxu1 %v695_v26  ;;  %v28_v17 = vld [vmem:[%s1435_s0 + $0x70] sm:$0xff]  ;;  %v33_v18 = vld [vmem:[%s1435_s0 + $0x98] sm:$0xff]  ;;  %v18_v30 = vld [vmem:[%s1435_s0 + $0x20] sm:$0xff] }
  0x15   :  { %697 = vmatprep.subr.bf16.mxu1 %v808_v0  ;;  %v144_v20 = vld [vmem:[%s1434_s1 + $0xf0] sm:$0xff]  ;;  %v145_v21 = vld [vmem:[%s1434_s1 + $0xf8] sm:$0xff]  ;;  %v23_v31 = vld [vmem:[%s1435_s0 + $0x48] sm:$0xff] }
  0x16   :  { %744 = vmatpush1.bf16.msra.mxu0 %v743_v37  ;;  %v32_v22 = vld [vmem:[%s1435_s0 + $0x90] sm:$0xff]  ;;  %v37_v23 = vld [vmem:[%s1435_s0 + $0xb8] sm:$0xff]  ;;  %v728_v24 = vpack.c.bf16 %v145_v21, %v144_v20  ;;  %v27_v35 = vld [vmem:[%s1435_s0 + $0x68] sm:$0xff] }
  0x17   :  { %745 = vmatprep.subr.bf16.mxu0 %v808_v0  ;;  %v36_v25 = vld [vmem:[%s1435_s0 + $0xb0] sm:$0xff]  ;;  %v41_v26 = vld [vmem:[%s1435_s0 + $0xd8] sm:$0xff]  ;;  %v26_v38 = vld [vmem:[%s1435_s0 + $0x60] sm:$0xff] }
  0x18   :  { %699 = vmatpush1.bf16.msra.mxu1 %v698_v34  ;;  %v40_v28 = vld [vmem:[%s1435_s0 + $0xd0] sm:$0xff]  ;;  %v45_v29 = vld [vmem:[%s1435_s0 + $0xf8] sm:$0xff]  ;;  %v22_v34 = vld [vmem:[%s1435_s0 + $0x40] sm:$0xff] }
  0x19   :  { %700 = vmatprep.subr.bf16.mxu1 %v808_v0  ;;  %v44_v32 = vld [vmem:[%s1435_s0 + $0xf0] sm:$0xff]  ;;  %v49_v33 = vld [vmem:[%s1435_s0 + $0x118] sm:$0xff]  ;;  %v31_v39 = vld [vmem:[%s1435_s0 + $0x88] sm:$0xff] }
  0x1a   :  { %747 = vmatpush1.bf16.msra.mxu0 %v746_v43  ;;  %v48_v36 = vld [vmem:[%s1435_s0 + $0x110] sm:$0xff]  ;;  %v53_v37 = vld [vmem:[%s1435_s0 + $0x138] sm:$0xff]  ;;  %v30_v42 = vld [vmem:[%s1435_s0 + $0x80] sm:$0xff] }
  0x1b   :  { %748 = vmatprep.subr.bf16.mxu0 %v808_v0  ;;  %v57_v41 = vld [vmem:[%s1435_s0 + $0x158] sm:$0xff]  ;;  %v35_v43 = vld [vmem:[%s1435_s0 + $0xa8] sm:$0xff]  ;;  %v56_v44 = vld [vmem:[%s1435_s0 + $0x150] sm:$0xff] }
  0x1c   :  { %702 = vmatpush1.bf16.msra.mxu1 %v701_v40  ;;  %v52_v40 = vld [vmem:[%s1435_s0 + $0x130] sm:$0xff]  ;;  %v61_v45 = vld [vmem:[%s1435_s0 + $0x178] sm:$0xff]  ;;  %v39_v47 = vld [vmem:[%s1435_s0 + $0xc8] sm:$0xff] }
  0x1d   :  { %703 = vmatprep.subr.bf16.mxu1 %v808_v0  ;;  %v60_v48 = vld [vmem:[%s1435_s0 + $0x170] sm:$0xff]  ;;  %v38_v50 = vld [vmem:[%s1435_s0 + $0xc0] sm:$0xff]  ;;  %v43_v51 = vld [vmem:[%s1435_s0 + $0xe8] sm:$0xff] }
  0x1e   :  { %750 = vmatpush1.bf16.msra.mxu0 %v749_v49  ;;  %v65_v49 = vld [vmem:[%s1435_s0 + $0x198] sm:$0xff]  ;;  %v42_v54 = vld [vmem:[%s1435_s0 + $0xe0] sm:$0xff]  ;;  %v68_v56 = vld [vmem:[%s1435_s0 + $0x1b0] sm:$0xff] }
  0x1f   :  { %751 = vmatprep.subr.bf16.mxu0 %v808_v0  ;;  %v69_v53 = vld [vmem:[%s1435_s0 + $0x1b8] sm:$0xff]  ;;  %v51_v59 = vld [vmem:[%s1435_s0 + $0x128] sm:$0xff]  ;;  %v72_v60 = vld [vmem:[%s1435_s0 + $0x1d0] sm:$0xff] }
  0x20   :  { %705 = vmatpush1.bf16.msra.mxu1 %v704_v46  ;;  %v34_v46 = vld [vmem:[%s1435_s0 + $0xa0] sm:$0xff]  ;;  %v73_v57 = vld [vmem:[%s1435_s0 + $0x1d8] sm:$0xff]  ;;  %v55_v63 = vld [vmem:[%s1435_s0 + $0x148] sm:$0xff] }
  0x21   :  { %706 = vmatprep.subr.bf16.mxu1 %v808_v0  ;;  %v76_v1 = vld [vmem:[%s1435_s0 + $0x1f0] sm:$0xff]  ;;  %v85_v6 = vld [vmem:[%s1435_s0 + $0x238] sm:$0xff]  ;;  %v62_v11 = vld [vmem:[%s1435_s0 + $0x180] sm:$0xff] }
  0x22   :  { %753 = vmatpush1.bf16.msra.mxu0 %v752_v55  ;;  %v47_v55 = vld [vmem:[%s1435_s0 + $0x108] sm:$0xff]  ;;  %v80_v5 = vld [vmem:[%s1435_s0 + $0x210] sm:$0xff]  ;;  %v89_v10 = vld [vmem:[%s1435_s0 + $0x258] sm:$0xff] }
  0x23   :  { %754 = vmatprep.subr.bf16.mxu0 %v808_v0  ;;  %v66_v15 = vld [vmem:[%s1435_s0 + $0x1a0] sm:$0xff]  ;;  %v71_v16 = vld [vmem:[%s1435_s0 + $0x1c8] sm:$0xff]  ;;  %v96_v21 = vld [vmem:[%s1435_s0 + $0x290] sm:$0xff] }
  0x24   :  { %708 = vmatpush1.bf16.msra.mxu1 %v707_v52  ;;  %v64_v52 = vld [vmem:[%s1435_s0 + $0x190] sm:$0xff]  ;;  %v75_v20 = vld [vmem:[%s1435_s0 + $0x1e8] sm:$0xff] }
  0x25   :  { %709 = vmatprep.subr.bf16.mxu1 %v808_v0 }
  0x26   :  { %756 = vmatpush1.bf16.msra.mxu0 %v755_v61  ;;  %v77_v61 = vld [vmem:[%s1435_s0 + $0x1f8] sm:$0xff] }
  0x28   :  { %711 = vmatpush1.bf16.msra.mxu1 %v710_v58  ;;  %v46_v58 = vld [vmem:[%s1435_s0 + $0x100] sm:$0xff] }
  0x29   :  { %712 = vmatprep.subr.bf16.mxu1 %v808_v0  ;;  %502 = vmatmul.mubr.f32.vlgmr.msra.gmra.mrb[0].mxu0 %v16_v2  ;;  %v81_v2 = vld [vmem:[%s1435_s0 + $0x218] sm:$0xff] }
  0x2a   :  { %658 = vmatprep.mubr.msk.f32.mxu0 %vm171_vm0, %v21_v3  ;;  %v54_v3 = vld [vmem:[%s1435_s0 + $0x140] sm:$0xff] }
  0x2c   :  { %714 = vmatpush1.bf16.msra.mxu1 %v713_v62  ;;  %v50_v62 = vld [vmem:[%s1435_s0 + $0x120] sm:$0xff] }
  0x2d   :  { %715 = vmatprep.subr.bf16.mxu1 %v808_v0  ;;  %507 = vmatmul.mubr.f32.gmra.mrb[2].mxu0 %v20_v7  ;;  %v58_v7 = vld [vmem:[%s1435_s0 + $0x160] sm:$0xff] }
  0x2e   :  { %659 = vmatprep.mubr.msk.f32.mxu0 %vm171_vm0, %v25_v8  ;;  %v63_v8 = vld [vmem:[%s1435_s0 + $0x188] sm:$0xff] }
  0x30   :  { %717 = vmatpush1.bf16.msra.mxu1 %v716_v4  ;;  %v59_v4 = vld [vmem:[%s1435_s0 + $0x168] sm:$0xff] }
  0x31   :  { %718 = vmatprep.subr.bf16.mxu1 %v808_v0  ;;  %512 = vmatmul.mubr.f32.gmra.mrb[4].mxu0 %v24_v12  ;;  %v67_v12 = vld [vmem:[%s1435_s0 + $0x1a8] sm:$0xff] }
  0x32   :  { %660 = vmatprep.mubr.msk.f32.mxu0 %vm171_vm0, %v29_v13  ;;  %v88_v13 = vld [vmem:[%s1435_s0 + $0x250] sm:$0xff] }
  0x34   :  { %720 = vmatpush1.bf16.msra.mxu1 %v719_v9  ;;  %v84_v9 = vld [vmem:[%s1435_s0 + $0x230] sm:$0xff] }
  0x35   :  { %721 = vmatprep.subr.bf16.mxu1 %v808_v0  ;;  %517 = vmatmul.mubr.f32.gmra.mrb[6].mxu0 %v28_v17  ;;  %v92_v17 = vld [vmem:[%s1435_s0 + $0x270] sm:$0xff] }
  0x36   :  { %661 = vmatprep.mubr.msk.f32.mxu0 %vm171_vm0, %v33_v18  ;;  %v97_v18 = vld [vmem:[%s1435_s0 + $0x298] sm:$0xff] }
  0x38   :  { %723 = vmatpush1.bf16.msra.mxu1 %v722_v14  ;;  %v93_v14 = vld [vmem:[%s1435_s0 + $0x278] sm:$0xff] }
  0x39   :  { %724 = vmatprep.subr.bf16.mxu1 %v808_v0  ;;  %522 = vmatmul.mubr.f32.gmra.mrb[8].mxu0 %v32_v22  ;;  %v101_v22 = vld [vmem:[%s1435_s0 + $0x2b8] sm:$0xff] }
  0x3a   :  { %662 = vmatprep.mubr.msk.f32.mxu0 %vm171_vm0, %v37_v23  ;;  %v74_v23 = vld [vmem:[%s1435_s0 + $0x1e0] sm:$0xff] }
  0x3c   :  { %726 = vmatpush1.bf16.msra.mxu1 %v725_v19  ;;  %v70_v19 = vld [vmem:[%s1435_s0 + $0x1c0] sm:$0xff] }
  0x3d   :  { %727 = vmatprep.subr.bf16.mxu1 %v808_v0  ;;  %527 = vmatmul.mubr.f32.gmra.mrb[10].mxu0 %v36_v25  ;;  %v19_v0 = vld [vmem:[%s1435_s0 + $0x28] sm:$0xff]  ;;  %v100_v25 = vld [vmem:[%s1435_s0 + $0x2b0] sm:$0xff] }
  0x3e   :  { %663 = vmatprep.mubr.msk.f32.mxu0 %vm171_vm0, %v41_v26  ;;  %v105_v26 = vld [vmem:[%s1435_s0 + $0x2d8] sm:$0xff] }
  0x40   :  { %729 = vmatpush1.bf16.msra.mxu1 %v728_v24  ;;  %v79_v24 = vld [vmem:[%s1435_s0 + $0x208] sm:$0xff] }
  0x41   :  { %532 = vmatmul.mubr.f32.gmra.mrb[12].mxu0 %v40_v28  ;;  %v104_v28 = vld [vmem:[%s1435_s0 + $0x2d0] sm:$0xff] }
  0x42   :  { %664 = vmatprep.mubr.msk.f32.mxu0 %vm171_vm0, %v45_v29  ;;  %v109_v29 = vld [vmem:[%s1435_s0 + $0x2f8] sm:$0xff] }
  0x43   :  { %312 = vmatmul.mubr.f32.vlgmr.msra.gmra.mrb[0].mxu1 %v14_v27  ;;  %v78_v27 = vld [vmem:[%s1435_s0 + $0x200] sm:$0xff] }
  0x44   :  { %316 = vmatprep.mubr.f32.mxu1 %v19_v0  ;;  %v83_v0 = vld [vmem:[%s1435_s0 + $0x228] sm:$0xff] }
  0x45   :  { %537 = vmatmul.mubr.f32.gmra.mrb[14].mxu0 %v44_v32  ;;  %v108_v32 = vld [vmem:[%s1435_s0 + $0x2f0] sm:$0xff] }
  0x46   :  { %665 = vmatprep.mubr.msk.f32.mxu0 %vm171_vm0, %v49_v33  ;;  %v113_v33 = vld [vmem:[%s1435_s0 + $0x318] sm:$0xff] }
  0x47   :  { %317 = vmatmul.mubr.f32.gmra.mrb[2].mxu1 %v18_v30  ;;  %v82_v30 = vld [vmem:[%s1435_s0 + $0x220] sm:$0xff] }
  0x48   :  { %321 = vmatprep.mubr.f32.mxu1 %v23_v31  ;;  %v87_v31 = vld [vmem:[%s1435_s0 + $0x248] sm:$0xff] }
  0x49   :  { %542 = vmatmul.mubr.f32.gmra.mrb[16].mxu0 %v48_v36  ;;  %v112_v36 = vld [vmem:[%s1435_s0 + $0x310] sm:$0xff] }
  0x4a   :  { %666 = vmatprep.mubr.msk.f32.mxu0 %vm171_vm0, %v53_v37  ;;  %v90_v37 = vld [vmem:[%s1435_s0 + $0x260] sm:$0xff] }
  0x4b   :  { %322 = vmatmul.mubr.f32.gmra.mrb[4].mxu1 %v22_v34  ;;  %v86_v34 = vld [vmem:[%s1435_s0 + $0x240] sm:$0xff] }
  0x4c   :  { %326 = vmatprep.mubr.f32.mxu1 %v27_v35  ;;  %v91_v35 = vld [vmem:[%s1435_s0 + $0x268] sm:$0xff] }
  0x4d   :  { %547 = vmatmul.mubr.f32.gmra.mrb[18].mxu0 %v52_v40  ;;  %v99_v40 = vld [vmem:[%s1435_s0 + $0x2a8] sm:$0xff] }
  0x4e   :  { %667 = vmatprep.mubr.msk.f32.mxu0 %vm171_vm0, %v57_v41  ;;  %v98_v41 = vld [vmem:[%s1435_s0 + $0x2a0] sm:$0xff] }
  0x4f   :  { %327 = vmatmul.mubr.f32.gmra.mrb[6].mxu1 %v26_v38  ;;  %v95_v38 = vld [vmem:[%s1435_s0 + $0x288] sm:$0xff] }
  0x50   :  { %331 = vmatprep.mubr.f32.mxu1 %v31_v39  ;;  %v94_v39 = vld [vmem:[%s1435_s0 + $0x280] sm:$0xff] }
  0x51   :  { %552 = vmatmul.mubr.f32.gmra.mrb[20].mxu0 %v56_v44  ;;  %v107_v44 = vld [vmem:[%s1435_s0 + $0x2e8] sm:$0xff] }
  0x52   :  { %668 = vmatprep.mubr.msk.f32.mxu0 %vm171_vm0, %v61_v45  ;;  %v106_v45 = vld [vmem:[%s1435_s0 + $0x2e0] sm:$0xff] }
  0x53   :  { %332 = vmatmul.mubr.f32.gmra.mrb[8].mxu1 %v30_v42  ;;  %v103_v42 = vld [vmem:[%s1435_s0 + $0x2c8] sm:$0xff] }
  0x54   :  { %336 = vmatprep.mubr.f32.mxu1 %v35_v43  ;;  %v102_v43 = vld [vmem:[%s1435_s0 + $0x2c0] sm:$0xff] }
  0x55   :  { %557 = vmatmul.mubr.f32.gmra.mrb[22].mxu0 %v60_v48 }
  0x56   :  { %669 = vmatprep.mubr.msk.f32.mxu0 %vm171_vm0, %v65_v49 }
  0x57   :  { %337 = vmatmul.mubr.f32.gmra.mrb[10].mxu1 %v34_v46  ;;  %v111_v46 = vld [vmem:[%s1435_s0 + $0x308] sm:$0xff] }
  0x58   :  { %341 = vmatprep.mubr.f32.mxu1 %v39_v47  ;;  %v110_v47 = vld [vmem:[%s1435_s0 + $0x300] sm:$0xff] }
  0x59   :  { %562 = vmatmul.mubr.f32.gmra.mrb[24].mxu0 %v64_v52 }
  0x5a   :  { %670 = vmatprep.mubr.msk.f32.mxu0 %vm171_vm0, %v69_v53 }
  0x5b   :  { %342 = vmatmul.mubr.f32.gmra.mrb[12].mxu1 %v38_v50 }
  0x5c   :  { %346 = vmatprep.mubr.f32.mxu1 %v43_v51 }
  0x5d   :  { %567 = vmatmul.mubr.f32.gmra.mrb[26].mxu0 %v68_v56 }
  0x5e   :  { %671 = vmatprep.mubr.msk.f32.mxu0 %vm171_vm0, %v73_v57 }
  0x5f   :  { %347 = vmatmul.mubr.f32.gmra.mrb[14].mxu1 %v42_v54 }
  0x60   :  { %351 = vmatprep.mubr.f32.mxu1 %v47_v55 }
  0x61   :  { %572 = vmatmul.mubr.f32.gmra.mrb[28].mxu0 %v72_v60 }
  0x62   :  { %672 = vmatprep.mubr.msk.f32.mxu0 %vm171_vm0, %v77_v61 }
  0x63   :  { %352 = vmatmul.mubr.f32.gmra.mrb[16].mxu1 %v46_v58 }
  0x64   :  { %356 = vmatprep.mubr.f32.mxu1 %v51_v59  ;;  %v1332_v59 = vld [vmem:[%s1436_s2] ss:$0 sm:$0xff] }
  0x65   :  { %577 = vmatmul.mubr.f32.gmra.mrb[30].mxu0 %v76_v1 }
  0x66   :  { %673 = vmatprep.mubr.msk.f32.mxu0 %vm171_vm0, %v81_v2 }
  0x67   :  { %357 = vmatmul.mubr.f32.gmra.mrb[18].mxu1 %v50_v62 }
  0x68   :  { %361 = vmatprep.mubr.f32.mxu1 %v55_v63 }
  0x69   :  { %582 = vmatmul.mubr.f32.gmra.mrb[32].mxu0 %v80_v5 }
  0x6a   :  { %674 = vmatprep.mubr.msk.f32.mxu0 %vm171_vm0, %v85_v6 }
  0x6b   :  { %362 = vmatmul.mubr.f32.gmra.mrb[20].mxu1 %v54_v3 }
  0x6c   :  { %366 = vmatprep.mubr.f32.mxu1 %v59_v4 }
  0x6d   :  { %587 = vmatmul.mubr.f32.gmra.mrb[34].mxu0 %v84_v9 }
  0x6e   :  { %675 = vmatprep.mubr.msk.f32.mxu0 %vm171_vm0, %v89_v10 }
  0x6f   :  { %367 = vmatmul.mubr.f32.gmra.mrb[22].mxu1 %v58_v7 }
  0x70   :  { %371 = vmatprep.mubr.f32.mxu1 %v63_v8 }
  0x71   :  { %592 = vmatmul.mubr.f32.gmra.mrb[36].mxu0 %v88_v13 }
  0x72   :  { %676 = vmatprep.mubr.msk.f32.mxu0 %vm171_vm0, %v93_v14 }
  0x73   :  { %372 = vmatmul.mubr.f32.gmra.mrb[24].mxu1 %v62_v11 }
  0x74   :  { %376 = vmatprep.mubr.f32.mxu1 %v67_v12 }
  0x75   :  { %597 = vmatmul.mubr.f32.gmra.mrb[38].mxu0 %v92_v17 }
  0x76   :  { %677 = vmatprep.mubr.msk.f32.mxu0 %vm171_vm0, %v97_v18 }
  0x77   :  { %377 = vmatmul.mubr.f32.gmra.mrb[26].mxu1 %v66_v15 }
  0x78   :  { %381 = vmatprep.mubr.f32.mxu1 %v71_v16 }
  0x79   :  { %602 = vmatmul.mubr.f32.gmra.mrb[40].mxu0 %v96_v21 }
  0x7a   :  { %678 = vmatprep.mubr.msk.f32.mxu0 %vm171_vm0, %v101_v22 }
  0x7b   :  { %382 = vmatmul.mubr.f32.gmra.mrb[28].mxu1 %v70_v19 }
  0x7c   :  { %386 = vmatprep.mubr.f32.mxu1 %v75_v20 }
  0x7d   :  { %607 = vmatmul.mubr.f32.gmra.mrb[42].mxu0 %v100_v25 }
  0x7e   :  { %679 = vmatprep.mubr.msk.f32.mxu0 %vm171_vm0, %v105_v26 }
  0x7f   :  { %387 = vmatmul.mubr.f32.gmra.mrb[30].mxu1 %v74_v23 }
  0x80   :  { %391 = vmatprep.mubr.f32.mxu1 %v79_v24 }
  0x81   :  { %612 = vmatmul.mubr.f32.gmra.mrb[44].mxu0 %v104_v28 }
  0x82   :  { %680 = vmatprep.mubr.msk.f32.mxu0 %vm171_vm0, %v109_v29 }
  0x83   :  { %392 = vmatmul.mubr.f32.gmra.mrb[32].mxu1 %v78_v27 }
  0x84   :  { %396 = vmatprep.mubr.f32.mxu1 %v83_v0 }
  0x85   :  { %617 = vmatmul.mubr.f32.gmra.mrb[46].mxu0 %v108_v32 }
  0x86   :  { %681 = vmatprep.mubr.msk.f32.mxu0 %vm171_vm0, %v113_v33 }
  0x87   :  { %397 = vmatmul.mubr.f32.gmra.mrb[34].mxu1 %v82_v30 }
  0x88   :  { %401 = vmatprep.mubr.f32.mxu1 %v87_v31 }
  0x89   :  { %622 = vmatmul.mubr.f32.gmra.mrb[48].mxu0 %v112_v36 }
  0x8b   :  { %402 = vmatmul.mubr.f32.gmra.mrb[36].mxu1 %v86_v34 }
  0x8c   :  { %406 = vmatprep.mubr.f32.mxu1 %v91_v35 }
  0x8f   :  { %407 = vmatmul.mubr.f32.gmra.mrb[38].mxu1 %v90_v37 }
  0x90   :  { %411 = vmatprep.mubr.f32.mxu1 %v95_v38 }
  0x93   :  { %412 = vmatmul.mubr.f32.gmra.mrb[40].mxu1 %v94_v39 }
  0x94   :  { %416 = vmatprep.mubr.f32.mxu1 %v99_v40 }
  0x97   :  { %417 = vmatmul.mubr.f32.gmra.mrb[42].mxu1 %v98_v41 }
  0x98   :  { %421 = vmatprep.mubr.f32.mxu1 %v103_v42 }
  0x9b   :  { %422 = vmatmul.mubr.f32.gmra.mrb[44].mxu1 %v102_v43 }
  0x9c   :  { %426 = vmatprep.mubr.f32.mxu1 %v107_v44 }
  0x9f   :  { %427 = vmatmul.mubr.f32.gmra.mrb[46].mxu1 %v106_v45 }
  0xa0   :  { %431 = vmatprep.mubr.f32.mxu1 %v111_v46 }
  0xa3   :  { %432 = vmatmul.mubr.f32.gmra.mrb[48].mxu1 %v110_v47 }
  0xfc   :  { %v503_v48 = vpop.f32.mrb[0].mxu0 }
  0xfd   :  { %v505_v49 = vpop.f32.mrb[1].mxu0 }
 0x100   :  { %v508_v50 = vpop.f32.mrb[2].mxu0 }
 0x101   :  { %v510_v51 = vpop.f32.mrb[3].mxu0 }
 0x104   :  { %v513_v52 = vpop.f32.mrb[4].mxu0 }
 0x105   :  { %v515_v53 = vpop.f32.mrb[5].mxu0 }
 0x108   :  { %v518_v54 = vpop.f32.mrb[6].mxu0 }
 0x109   :  { %v520_v55 = vpop.f32.mrb[7].mxu0 }
 0x10c   :  { %v523_v56 = vpop.f32.mrb[8].mxu0 }
 0x10d   :  { %v525_v57 = vpop.f32.mrb[9].mxu0 }
 0x110   :  { %v528_v58 = vpop.f32.mrb[10].mxu0 }
 0x111   :  { %v530_v60 = vpop.f32.mrb[11].mxu0 }
 0x114   :  { %v533_v1 = vpop.f32.mrb[12].mxu0 }
 0x115   :  { %v535_v2 = vpop.f32.mrb[13].mxu0 }
 0x116   :  { %v313_v61 = vpop.f32.mrb[0].mxu1 }
 0x117   :  { %v314_v62 = vadd.f32 %v1332_v59, %v313_v61  ;;  %v315_v63 = vpop.f32.mrb[1].mxu1 }
 0x118   :  { %v538_v7 = vpop.f32.mrb[14].mxu0 }
 0x119   :  { %v504_v3 = vadd.f32 %v503_v48, %v314_v62  ;;  %v540_v8 = vpop.f32.mrb[15].mxu0 }
 0x11a   :  { %v318_v4 = vpop.f32.mrb[2].mxu1 }
 0x11b   :  { %627 = vst [vmem:[%s1437_s3] sm:$0xff] %v504_v3  ;;  %v319_v5 = vadd.f32 %v1332_v59, %v318_v4  ;;  %v320_v6 = vpop.f32.mrb[3].mxu1 }
 0x11c   :  { %v543_v13 = vpop.f32.mrb[16].mxu0 }
 0x11d   :  { %v509_v9 = vadd.f32 %v508_v50, %v319_v5  ;;  %v545_v14 = vpop.f32.mrb[17].mxu0 }
 0x11e   :  { %v323_v10 = vpop.f32.mrb[4].mxu1 }
 0x11f   :  { %628 = vst [vmem:[%s1437_s3 + $0x8] sm:$0xff] %v509_v9  ;;  %v324_v11 = vadd.f32 %v1332_v59, %v323_v10  ;;  %v325_v12 = vpop.f32.mrb[5].mxu1 }
 0x120   :  { %v548_v19 = vpop.f32.mrb[18].mxu0 }
 0x121   :  { %v514_v15 = vadd.f32 %v513_v52, %v324_v11  ;;  %v550_v20 = vpop.f32.mrb[19].mxu0 }
 0x122   :  { %v328_v16 = vpop.f32.mrb[6].mxu1 }
 0x123   :  { %629 = vst [vmem:[%s1437_s3 + $0x10] sm:$0xff] %v514_v15  ;;  %v329_v17 = vadd.f32 %v1332_v59, %v328_v16  ;;  %v330_v18 = vpop.f32.mrb[7].mxu1 }
 0x124   :  { %v553_v25 = vpop.f32.mrb[20].mxu0 }
 0x125   :  { %v519_v21 = vadd.f32 %v518_v54, %v329_v17  ;;  %v555_v26 = vpop.f32.mrb[21].mxu0 }
 0x126   :  { %v333_v22 = vpop.f32.mrb[8].mxu1 }
 0x127   :  { %630 = vst [vmem:[%s1437_s3 + $0x18] sm:$0xff] %v519_v21  ;;  %v334_v23 = vadd.f32 %v1332_v59, %v333_v22  ;;  %v335_v24 = vpop.f32.mrb[9].mxu1 }
 0x128   :  { %v558_v30 = vpop.f32.mrb[22].mxu0 }
 0x129   :  { %v524_v27 = vadd.f32 %v523_v56, %v334_v23  ;;  %v560_v31 = vpop.f32.mrb[23].mxu0 }
 0x12a   :  { %v338_v0 = vpop.f32.mrb[10].mxu1 }
 0x12b   :  { %631 = vst [vmem:[%s1437_s3 + $0x20] sm:$0xff] %v524_v27  ;;  %v339_v28 = vadd.f32 %v1332_v59, %v338_v0  ;;  %v340_v29 = vpop.f32.mrb[11].mxu1 }
 0x12c   :  { %v563_v36 = vpop.f32.mrb[24].mxu0 }
 0x12d   :  { %v529_v32 = vadd.f32 %v528_v58, %v339_v28  ;;  %v565_v37 = vpop.f32.mrb[25].mxu0 }
 0x12e   :  { %v343_v33 = vpop.f32.mrb[12].mxu1 }
 0x12f   :  { %632 = vst [vmem:[%s1437_s3 + $0x28] sm:$0xff] %v529_v32  ;;  %v344_v34 = vadd.f32 %v1332_v59, %v343_v33  ;;  %v345_v35 = vpop.f32.mrb[13].mxu1 }
 0x130   :  { %v568_v42 = vpop.f32.mrb[26].mxu0 }
 0x131   :  { %v534_v38 = vadd.f32 %v533_v1, %v344_v34  ;;  %v570_v43 = vpop.f32.mrb[27].mxu0 }
 0x132   :  { %v348_v39 = vpop.f32.mrb[14].mxu1 }
 0x133   :  { %633 = vst [vmem:[%s1437_s3 + $0x30] sm:$0xff] %v534_v38  ;;  %v349_v40 = vadd.f32 %v1332_v59, %v348_v39  ;;  %v350_v41 = vpop.f32.mrb[15].mxu1 }
 0x134   :  { %v573_v48 = vpop.f32.mrb[28].mxu0 }
 0x135   :  { %v539_v44 = vadd.f32 %v538_v7, %v349_v40  ;;  %v575_v49 = vpop.f32.mrb[29].mxu0 }
 0x136   :  { %v353_v45 = vpop.f32.mrb[16].mxu1 }
 0x137   :  { %634 = vst [vmem:[%s1437_s3 + $0x38] sm:$0xff] %v539_v44  ;;  %v354_v46 = vadd.f32 %v1332_v59, %v353_v45  ;;  %v355_v47 = vpop.f32.mrb[17].mxu1 }
 0x138   :  { %v578_v54 = vpop.f32.mrb[30].mxu0 }
 0x139   :  { %v544_v50 = vadd.f32 %v543_v13, %v354_v46  ;;  %v580_v55 = vpop.f32.mrb[31].mxu0 }
 0x13a   :  { %v358_v51 = vpop.f32.mrb[18].mxu1 }
 0x13b   :  { %635 = vst [vmem:[%s1437_s3 + $0x40] sm:$0xff] %v544_v50  ;;  %v359_v52 = vadd.f32 %v1332_v59, %v358_v51  ;;  %v360_v53 = vpop.f32.mrb[19].mxu1 }
 0x13c   :  { %v583_v61 = vpop.f32.mrb[32].mxu0 }
 0x13d   :  { %v549_v56 = vadd.f32 %v548_v19, %v359_v52  ;;  %v585_v62 = vpop.f32.mrb[33].mxu0 }
 0x13e   :  { %v363_v57 = vpop.f32.mrb[20].mxu1 }
 0x13f   :  { %636 = vst [vmem:[%s1437_s3 + $0x48] sm:$0xff] %v549_v56  ;;  %v364_v58 = vadd.f32 %v1332_v59, %v363_v57  ;;  %v365_v60 = vpop.f32.mrb[21].mxu1 }
 0x140   :  { %v588_v4 = vpop.f32.mrb[34].mxu0 }
 0x141   :  { %v554_v63 = vadd.f32 %v553_v25, %v364_v58  ;;  %v590_v5 = vpop.f32.mrb[35].mxu0 }
 0x142   :  { %v368_v1 = vpop.f32.mrb[22].mxu1 }
 0x143   :  { %637 = vst [vmem:[%s1437_s3 + $0x50] sm:$0xff] %v554_v63  ;;  %v369_v2 = vadd.f32 %v1332_v59, %v368_v1  ;;  %v370_v3 = vpop.f32.mrb[23].mxu1 }
 0x144   :  { %v593_v10 = vpop.f32.mrb[36].mxu0 }
 0x145   :  { %v559_v6 = vadd.f32 %v558_v30, %v369_v2  ;;  %v595_v11 = vpop.f32.mrb[37].mxu0 }
 0x146   :  { %v373_v7 = vpop.f32.mrb[24].mxu1 }
 0x147   :  { %638 = vst [vmem:[%s1437_s3 + $0x58] sm:$0xff] %v559_v6  ;;  %v374_v8 = vadd.f32 %v1332_v59, %v373_v7  ;;  %v375_v9 = vpop.f32.mrb[25].mxu1 }
 0x148   :  { %v598_v16 = vpop.f32.mrb[38].mxu0 }
 0x149   :  { %v564_v12 = vadd.f32 %v563_v36, %v374_v8  ;;  %v600_v17 = vpop.f32.mrb[39].mxu0 }
 0x14a   :  { %v378_v13 = vpop.f32.mrb[26].mxu1 }
 0x14b   :  { %639 = vst [vmem:[%s1437_s3 + $0x60] sm:$0xff] %v564_v12  ;;  %v379_v14 = vadd.f32 %v1332_v59, %v378_v13  ;;  %v380_v15 = vpop.f32.mrb[27].mxu1 }
 0x14c   :  { %v603_v22 = vpop.f32.mrb[40].mxu0 }
 0x14d   :  { %v569_v18 = vadd.f32 %v568_v42, %v379_v14  ;;  %v605_v23 = vpop.f32.mrb[41].mxu0 }
 0x14e   :  { %v383_v19 = vpop.f32.mrb[28].mxu1 }
 0x14f   :  { %640 = vst [vmem:[%s1437_s3 + $0x68] sm:$0xff] %v569_v18  ;;  %v384_v20 = vadd.f32 %v1332_v59, %v383_v19  ;;  %v385_v21 = vpop.f32.mrb[29].mxu1 }
 0x150   :  { %v608_v0 = vpop.f32.mrb[42].mxu0 }
 0x151   :  { %v574_v24 = vadd.f32 %v573_v48, %v384_v20  ;;  %v610_v28 = vpop.f32.mrb[43].mxu0 }
 0x152   :  { %v388_v25 = vpop.f32.mrb[30].mxu1 }
 0x153   :  { %641 = vst [vmem:[%s1437_s3 + $0x70] sm:$0xff] %v574_v24  ;;  %v389_v26 = vadd.f32 %v1332_v59, %v388_v25  ;;  %v390_v27 = vpop.f32.mrb[31].mxu1 }
 0x154   :  { %v613_v33 = vpop.f32.mrb[44].mxu0 }
 0x155   :  { %v579_v29 = vadd.f32 %v578_v54, %v389_v26  ;;  %v615_v34 = vpop.f32.mrb[45].mxu0 }
 0x156   :  { %v393_v30 = vpop.f32.mrb[32].mxu1 }
 0x157   :  { %642 = vst [vmem:[%s1437_s3 + $0x78] sm:$0xff] %v579_v29  ;;  %v394_v31 = vadd.f32 %v1332_v59, %v393_v30  ;;  %v395_v32 = vpop.f32.mrb[33].mxu1 }
 0x158   :  { %v618_v39 = vpop.f32.mrb[46].mxu0 }
 0x159   :  { %v584_v35 = vadd.f32 %v583_v61, %v394_v31  ;;  %v620_v40 = vpop.f32.mrb[47].mxu0 }
 0x15a   :  { %v398_v36 = vpop.f32.mrb[34].mxu1 }
 0x15b   :  { %643 = vst [vmem:[%s1437_s3 + $0x80] sm:$0xff] %v584_v35  ;;  %v399_v37 = vadd.f32 %v1332_v59, %v398_v36  ;;  %v400_v38 = vpop.f32.mrb[35].mxu1 }
 0x15c   :  { %v623_v45 = vpop.f32.mrb[48].mxu0 }
 0x15d   :  { %v589_v41 = vadd.f32 %v588_v4, %v399_v37  ;;  %v625_v46 = vpop.f32.mrb[49].mxu0 }
 0x15e   :  { %v403_v42 = vpop.f32.mrb[36].mxu1 }
 0x15f   :  { %644 = vst [vmem:[%s1437_s3 + $0x88] sm:$0xff] %v589_v41  ;;  %v404_v43 = vadd.f32 %v1332_v59, %v403_v42  ;;  %v405_v44 = vpop.f32.mrb[37].mxu1 }
 0x161   :  { %v594_v47 = vadd.f32 %v593_v10, %v404_v43 }
 0x162   :  { %v408_v48 = vpop.f32.mrb[38].mxu1 }
 0x163   :  { %645 = vst [vmem:[%s1437_s3 + $0x90] sm:$0xff] %v594_v47  ;;  %v409_v49 = vadd.f32 %v1332_v59, %v408_v48  ;;  %v410_v50 = vpop.f32.mrb[39].mxu1 }
 0x165   :  { %v599_v51 = vadd.f32 %v598_v16, %v409_v49 }
 0x166   :  { %v413_v52 = vpop.f32.mrb[40].mxu1 }
 0x167   :  { %646 = vst [vmem:[%s1437_s3 + $0x98] sm:$0xff] %v599_v51  ;;  %v414_v53 = vadd.f32 %v1332_v59, %v413_v52  ;;  %v415_v54 = vpop.f32.mrb[41].mxu1 }
 0x169   :  { %v604_v55 = vadd.f32 %v603_v22, %v414_v53 }
 0x16a   :  { %v418_v56 = vpop.f32.mrb[42].mxu1 }
 0x16b   :  { %647 = vst [vmem:[%s1437_s3 + $0xa0] sm:$0xff] %v604_v55  ;;  %v419_v57 = vadd.f32 %v1332_v59, %v418_v56  ;;  %v420_v58 = vpop.f32.mrb[43].mxu1 }
 0x16d   :  { %v609_v60 = vadd.f32 %v608_v0, %v419_v57 }
 0x16e   :  { %v423_v61 = vpop.f32.mrb[44].mxu1 }
 0x16f   :  { %648 = vst [vmem:[%s1437_s3 + $0xa8] sm:$0xff] %v609_v60  ;;  %v424_v62 = vadd.f32 %v1332_v59, %v423_v61  ;;  %v425_v63 = vpop.f32.mrb[45].mxu1 }
 0x171   :  { %v614_v1 = vadd.f32 %v613_v33, %v424_v62 }
 0x172   :  { %v428_v2 = vpop.f32.mrb[46].mxu1 }
 0x173   :  { %649 = vst [vmem:[%s1437_s3 + $0xb0] sm:$0xff] %v614_v1  ;;  %v429_v3 = vadd.f32 %v1332_v59, %v428_v2  ;;  %v430_v4 = vpop.f32.mrb[47].mxu1 }
 0x175   :  { %v619_v5 = vadd.f32 %v618_v39, %v429_v3 }
 0x176   :  { %v433_v6 = vpop.f32.mrb[48].mxu1 }
 0x177   :  { %650 = vst [vmem:[%s1437_s3 + $0xb8] sm:$0xff] %v619_v5  ;;  %v434_v7 = vadd.f32 %v1332_v59, %v433_v6  ;;  %v435_v8 = vpop.f32.mrb[49].mxu1 }
 0x179   :  { %v624_v9 = vadd.f32 %v623_v45, %v434_v7 }
 0x17b   :  { %651 = vst [vmem:[%s1437_s3 + $0xc0] sm:$0xff] %v624_v9 }

// kernel: lenet5_forward.8
= control target key start
LH: loop header
LB: loop body
LE: loop exit
PB: predicated region body
PF: predicated region fallthrough
CT: control target
= control target key end

     0   :  { %s207_s0 = inlined_call_operand.vmem [shape: f32[50,128], index: 0, kind: input, shape index: {}]   ;;  %s208_s1 = inlined_call_operand.vmem [shape: f32[50,128], index: 1, kind: input, shape index: {}]   ;;  %s209_s2 = inlined_call_operand.vmem [shape: f32[50,128], index: 2, kind: input, shape index: {}]   ;;  %s210_s3 = inlined_call_operand.vmem [shape: f32[50,128], index: 3, kind: input, shape index: {}]   ;;  %s211_s4 = inlined_call_operand.vmem [shape: f32[50,128], index: 4, kind: output, shape index: {}]  }
   0x1   :  { %v17_v0 = vld [vmem:[%s207_s0] sm:$0xff]  ;;  %v18_v5 = vld [vmem:[%s207_s0 + $0x8] sm:$0xff]  ;;  %v19_v11 = vld [vmem:[%s207_s0 + $0x10] sm:$0xff] }
   0x2   :  { %v24_v1 = vld [vmem:[%s208_s1] sm:$0xff]  ;;  %v25_v6 = vld [vmem:[%s208_s1 + $0x8] sm:$0xff]  ;;  %v26_v13 = vld [vmem:[%s208_s1 + $0x10] sm:$0xff] }
   0x3   :  { %v38_v2 = vld [vmem:[%s209_s2] sm:$0xff]  ;;  %v31_v3 = vmax.f32 %v17_v0, %v24_v1  ;;  %v32_v8 = vmax.f32 %v18_v5, %v25_v6  ;;  %v39_v9 = vld [vmem:[%s209_s2 + $0x8] sm:$0xff]  ;;  %v40_v14 = vld [vmem:[%s209_s2 + $0x10] sm:$0xff]  ;;  %v33_v17 = vmax.f32 %v19_v11, %v26_v13 }
   0x4   :  { %v45_v4 = vld [vmem:[%s210_s3] sm:$0xff]  ;;  %v46_v10 = vld [vmem:[%s210_s3 + $0x8] sm:$0xff]  ;;  %v47_v15 = vld [vmem:[%s210_s3 + $0x10] sm:$0xff] }
   0x5   :  { %v52_v7 = vmax.f32 %v38_v2, %v45_v4  ;;  %v53_v12 = vmax.f32 %v39_v9, %v46_v10  ;;  %v54_v18 = vmax.f32 %v40_v14, %v47_v15  ;;  %v20_v19 = vld [vmem:[%s207_s0 + $0x18] sm:$0xff]  ;;  %v21_v25 = vld [vmem:[%s207_s0 + $0x20] sm:$0xff]  ;;  %v22_v32 = vld [vmem:[%s207_s0 + $0x28] sm:$0xff] }
   0x6   :  { %v27_v20 = vld [vmem:[%s208_s1 + $0x18] sm:$0xff]  ;;  %v28_v26 = vld [vmem:[%s208_s1 + $0x20] sm:$0xff]  ;;  %v29_v34 = vld [vmem:[%s208_s1 + $0x28] sm:$0xff] }
   0x7   :  { %v59_v16 = vmax.f32 %v31_v3, %v52_v7  ;;  %v41_v21 = vld [vmem:[%s209_s2 + $0x18] sm:$0xff]  ;;  %v60_v22 = vmax.f32 %v32_v8, %v53_v12  ;;  %v34_v23 = vmax.f32 %v20_v19, %v27_v20  ;;  %v61_v27 = vmax.f32 %v33_v17, %v54_v18  ;;  %v42_v30 = vld [vmem:[%s209_s2 + $0x20] sm:$0xff]  ;;  %v43_v35 = vld [vmem:[%s209_s2 + $0x28] sm:$0xff] }
   0x8   :  { %v48_v24 = vld [vmem:[%s210_s3 + $0x18] sm:$0xff]  ;;  %v35_v29 = vmax.f32 %v21_v25, %v28_v26  ;;  %v49_v31 = vld [vmem:[%s210_s3 + $0x20] sm:$0xff]  ;;  %v50_v36 = vld [vmem:[%s210_s3 + $0x28] sm:$0xff]  ;;  %v36_v38 = vmax.f32 %v22_v32, %v29_v34 }
   0x9   :  { %66 = vst [vmem:[%s211_s4] sm:$0xff] %v59_v16  ;;  %v55_v28 = vmax.f32 %v41_v21, %v48_v24  ;;  %67 = vst [vmem:[%s211_s4 + $0x8] sm:$0xff] %v60_v22  ;;  %v56_v33 = vmax.f32 %v42_v30, %v49_v31  ;;  %v57_v39 = vmax.f32 %v43_v35, %v50_v36  ;;  %v23_v40 = vld [vmem:[%s207_s0 + $0x30] sm:$0x3] }
   0xa   :  { %68 = vst [vmem:[%s211_s4 + $0x10] sm:$0xff] %v61_v27  ;;  %v30_v41 = vld [vmem:[%s208_s1 + $0x30] sm:$0x3] }
   0xb   :  { %v62_v37 = vmax.f32 %v34_v23, %v55_v28  ;;  %v44_v42 = vld [vmem:[%s209_s2 + $0x30] sm:$0x3]  ;;  %v63_v43 = vmax.f32 %v35_v29, %v56_v33  ;;  %v37_v44 = vmax.f32 %v23_v40, %v30_v41  ;;  %v64_v46 = vmax.f32 %v36_v38, %v57_v39 }
   0xc   :  { %v51_v45 = vld [vmem:[%s210_s3 + $0x30] sm:$0x3] }
   0xd   :  { %69 = vst [vmem:[%s211_s4 + $0x18] sm:$0xff] %v62_v37  ;;  %v58_v47 = vmax.f32 %v44_v42, %v51_v45  ;;  %70 = vst [vmem:[%s211_s4 + $0x20] sm:$0xff] %v63_v43 }
   0xe   :  { %71 = vst [vmem:[%s211_s4 + $0x28] sm:$0xff] %v64_v46 }
   0xf   :  { %v65_v48 = vmax.f32 %v37_v44, %v58_v47 }
  0x11   :  { %72 = vst [vmem:[%s211_s4 + $0x30] sm:$0x3] %v65_v48 }

// kernel: lenet5_forward.9
= control target key start
LH: loop header
LB: loop body
LE: loop exit
PB: predicated region body
PF: predicated region fallthrough
CT: control target
= control target key end

     0   :  { %v835_v43 = vmov 1983009808   ;;  %v136_v45 = vlaneseq  ;;  %s1225_s0 = inlined_call_operand.vmem [shape: f32[2,800], index: 0, kind: input, shape index: {}]   ;;  %s1226_s1 = inlined_call_operand.vmem [shape: f32[800,32], index: 1, kind: input, shape index: {}]   ;;  %s1227_s2 = inlined_call_operand.vmem [shape: f32[1,32], index: 2, kind: input, shape index: {}]   ;;  %s1228_s3 = inlined_call_operand.vmem [shape: f32[32,10], index: 3, kind: input, shape index: {}]   ;;  %s1229_s4 = inlined_call_operand.vmem [shape: f32[1,10], index: 4, kind: input, shape index: {}]   ;;  %s1230_s5 = inlined_call_operand.hbm [shape: f32[2,10], index: 5, kind: output, shape index: {}]  }
   0x1   :  { %v39_v0 = vld [vmem:[%s1226_s1 + $0x80] sm:$0xff]  ;;  %v40_v1 = vld [vmem:[%s1226_s1 + $0x88] sm:$0xff]  ;;  %v41_v11 = vld [vmem:[%s1226_s1 + $0x90] sm:$0xff]  ;;  %v134_v44 = vunpack.c.l.s4 %v835_v43 }
   0x2   :  { %v23_v2 = vld [vmem:[%s1226_s1] sm:$0xff]  ;;  %v696_v3 = vpack.c.bf16 %v40_v1, %v39_v0  ;;  %v24_v4 = vld [vmem:[%s1226_s1 + $0x8] sm:$0xff]  ;;  %v42_v13 = vld [vmem:[%s1226_s1 + $0x98] sm:$0xff]  ;;  %v137_v60 = vshrl.u32 %v136_v45, 7 }
   0x3   :  { %v71_v5 = vld [vmem:[%s1226_s1 + $0x180] sm:$0xff]  ;;  %v72_v6 = vld [vmem:[%s1226_s1 + $0x188] sm:$0xff]  ;;  %v698_v7 = vpack.c.bf16 %v24_v4, %v23_v2  ;;  %v25_v14 = vld [vmem:[%s1226_s1 + $0x10] sm:$0xff]  ;;  %v700_v16 = vpack.c.bf16 %v42_v13, %v41_v11  ;;  %v135_v59 = vunpack.c.0.s8 %v134_v44 }
   0x4   :  { %v728_v8 = vpack.c.bf16 %v72_v6, %v71_v5  ;;  %v55_v9 = vld [vmem:[%s1226_s1 + $0x100] sm:$0xff]  ;;  %v56_v10 = vld [vmem:[%s1226_s1 + $0x108] sm:$0xff]  ;;  %697 = vmatprep.subr.bf16.mxu0 %v696_v3  ;;  %v26_v15 = vld [vmem:[%s1226_s1 + $0x18] sm:$0xff] }
   0x5   :  { %v730_v12 = vpack.c.bf16 %v56_v10, %v55_v9  ;;  %699 = vmatpush3.bf16.msra.mxu0 %v698_v7  ;;  %v702_v17 = vpack.c.bf16 %v26_v15, %v25_v14  ;;  %v73_v18 = vld [vmem:[%s1226_s1 + $0x190] sm:$0xff]  ;;  %v74_v19 = vld [vmem:[%s1226_s1 + $0x198] sm:$0xff]  ;;  %v43_v23 = vld [vmem:[%s1226_s1 + $0xa0] sm:$0xff]  ;;  %v1014_v10 = vsub.s32 %v135_v59, %v137_v60 }
   0x6   :  { %729 = vmatprep.subr.bf16.mxu1 %v728_v8  ;;  %v57_v20 = vld [vmem:[%s1226_s1 + $0x110] sm:$0xff]  ;;  %v732_v21 = vpack.c.bf16 %v74_v19, %v73_v18  ;;  %v58_v22 = vld [vmem:[%s1226_s1 + $0x118] sm:$0xff]  ;;  %v44_v24 = vld [vmem:[%s1226_s1 + $0xa8] sm:$0xff]  ;;  %701 = vmatprep.subr.bf16.mxu0 %v700_v16 }
   0x7   :  { %731 = vmatpush3.bf16.msra.mxu1 %v730_v12  ;;  %v734_v25 = vpack.c.bf16 %v58_v22, %v57_v20  ;;  %v704_v26 = vpack.c.bf16 %v44_v24, %v43_v23  ;;  %v27_v27 = vld [vmem:[%s1226_s1 + $0x20] sm:$0xff]  ;;  %v28_v28 = vld [vmem:[%s1226_s1 + $0x28] sm:$0xff]  ;;  %v45_v35 = vld [vmem:[%s1226_s1 + $0xb0] sm:$0xff] }
   0x8   :  { %v75_v29 = vld [vmem:[%s1226_s1 + $0x1a0] sm:$0xff]  ;;  %733 = vmatprep.subr.bf16.mxu1 %v732_v21  ;;  %v76_v30 = vld [vmem:[%s1226_s1 + $0x1a8] sm:$0xff]  ;;  %v706_v33 = vpack.c.bf16 %v28_v28, %v27_v27  ;;  %v46_v36 = vld [vmem:[%s1226_s1 + $0xb8] sm:$0xff] }
   0x9   :  { %v59_v31 = vld [vmem:[%s1226_s1 + $0x120] sm:$0xff]  ;;  %v60_v32 = vld [vmem:[%s1226_s1 + $0x128] sm:$0xff]  ;;  %703 = vmatpush3.bf16.msra.mxu0 %v702_v17  ;;  %v736_v34 = vpack.c.bf16 %v76_v30, %v75_v29  ;;  %v29_v37 = vld [vmem:[%s1226_s1 + $0x30] sm:$0xff]  ;;  %v708_v39 = vpack.c.bf16 %v46_v36, %v45_v35 }
   0xa   :  { %705 = vmatprep.subr.bf16.mxu0 %v704_v26  ;;  %v738_v38 = vpack.c.bf16 %v60_v32, %v59_v31  ;;  %v30_v40 = vld [vmem:[%s1226_s1 + $0x38] sm:$0xff]  ;;  %v77_v41 = vld [vmem:[%s1226_s1 + $0x1b0] sm:$0xff]  ;;  %v47_v49 = vld [vmem:[%s1226_s1 + $0xc0] sm:$0xff] }
   0xb   :  { %735 = vmatpush3.bf16.msra.mxu1 %v734_v25  ;;  %v78_v42 = vld [vmem:[%s1226_s1 + $0x1b8] sm:$0xff]  ;;  %v61_v47 = vld [vmem:[%s1226_s1 + $0x130] sm:$0xff]  ;;  %v48_v50 = vld [vmem:[%s1226_s1 + $0xc8] sm:$0xff]  ;;  %v710_v51 = vpack.c.bf16 %v30_v40, %v29_v37 }
   0xc   :  { %737 = vmatprep.subr.bf16.mxu1 %v736_v34  ;;  %v740_v46 = vpack.c.bf16 %v78_v42, %v77_v41  ;;  %v62_v48 = vld [vmem:[%s1226_s1 + $0x138] sm:$0xff]  ;;  %v79_v52 = vld [vmem:[%s1226_s1 + $0x1c0] sm:$0xff]  ;;  %v80_v53 = vld [vmem:[%s1226_s1 + $0x1c8] sm:$0xff]  ;;  %v712_v55 = vpack.c.bf16 %v48_v50, %v47_v49 }
   0xd   :  { %707 = vmatpush3.bf16.msra.mxu0 %v706_v33  ;;  %v742_v54 = vpack.c.bf16 %v62_v48, %v61_v47  ;;  %v31_v56 = vld [vmem:[%s1226_s1 + $0x40] sm:$0xff]  ;;  %v32_v57 = vld [vmem:[%s1226_s1 + $0x48] sm:$0xff]  ;;  %v744_v61 = vpack.c.bf16 %v80_v53, %v79_v52  ;;  %v49_v63 = vld [vmem:[%s1226_s1 + $0xd0] sm:$0xff] }
   0xe   :  { %709 = vmatprep.subr.bf16.mxu0 %v708_v39  ;;  %v63_v58 = vld [vmem:[%s1226_s1 + $0x140] sm:$0xff]  ;;  %v64_v62 = vld [vmem:[%s1226_s1 + $0x148] sm:$0xff]  ;;  %v50_v0 = vld [vmem:[%s1226_s1 + $0xd8] sm:$0xff]  ;;  %v714_v3 = vpack.c.bf16 %v32_v57, %v31_v56 }
   0xf   :  { %739 = vmatpush3.bf16.msra.mxu1 %v738_v38  ;;  %v81_v1 = vld [vmem:[%s1226_s1 + $0x1d0] sm:$0xff]  ;;  %v82_v2 = vld [vmem:[%s1226_s1 + $0x1d8] sm:$0xff]  ;;  %v746_v5 = vpack.c.bf16 %v64_v62, %v63_v58  ;;  %v716_v6 = vpack.c.bf16 %v50_v0, %v49_v63  ;;  %v51_v12 = vld [vmem:[%s1226_s1 + $0xe0] sm:$0xff] }
  0x10   :  { %741 = vmatprep.subr.bf16.mxu1 %v740_v46  ;;  %v33_v4 = vld [vmem:[%s1226_s1 + $0x50] sm:$0xff]  ;;  %v34_v7 = vld [vmem:[%s1226_s1 + $0x58] sm:$0xff]  ;;  %v748_v11 = vpack.c.bf16 %v82_v2, %v81_v1  ;;  %v52_v13 = vld [vmem:[%s1226_s1 + $0xe8] sm:$0xff] }
  0x11   :  { %711 = vmatpush3.bf16.msra.mxu0 %v710_v51  ;;  %v65_v8 = vld [vmem:[%s1226_s1 + $0x150] sm:$0xff]  ;;  %v66_v9 = vld [vmem:[%s1226_s1 + $0x158] sm:$0xff]  ;;  %v83_v14 = vld [vmem:[%s1226_s1 + $0x1e0] sm:$0xff]  ;;  %v718_v16 = vpack.c.bf16 %v34_v7, %v33_v4  ;;  %v720_v19 = vpack.c.bf16 %v52_v13, %v51_v12 }
  0x12   :  { %713 = vmatprep.subr.bf16.mxu0 %v712_v55  ;;  %v84_v15 = vld [vmem:[%s1226_s1 + $0x1e8] sm:$0xff]  ;;  %v750_v17 = vpack.c.bf16 %v66_v9, %v65_v8  ;;  %v21_v18 = vld [vmem:[%s1225_s0] sm:$0xff]  ;;  %v53_v27 = vld [vmem:[%s1226_s1 + $0xf0] sm:$0xff] }
  0x13   :  { %743 = vmatpush3.bf16.msra.mxu1 %v742_v54  ;;  %v35_v20 = vld [vmem:[%s1226_s1 + $0x60] sm:$0xff]  ;;  %v36_v21 = vld [vmem:[%s1226_s1 + $0x68] sm:$0xff]  ;;  %v139_v23 = vrot.slane %v21_v18, %v1014_v10  ;;  %v132_v24 = vcombine.high %v21_v18, %v21_v18  ;;  %v752_v25 = vpack.c.bf16 %v84_v15, %v83_v14  ;;  %v54_v28 = vld [vmem:[%s1226_s1 + $0xf8] sm:$0xff] }
  0x14   :  { %745 = vmatprep.subr.bf16.mxu1 %v744_v61  ;;  %v67_v22 = vld [vmem:[%s1226_s1 + $0x160] sm:$0xff]  ;;  %v68_v26 = vld [vmem:[%s1226_s1 + $0x168] sm:$0xff]  ;;  %v85_v29 = vld [vmem:[%s1226_s1 + $0x1f0] sm:$0xff]  ;;  %v722_v33 = vpack.c.bf16 %v36_v21, %v35_v20  ;;  %v724_v35 = vpack.c.bf16 %v54_v28, %v53_v27  ;;  %v836_v61 = vmov 0.0|0.0  }
  0x15   :  { %715 = vmatpush3.bf16.msra.mxu0 %v714_v3  ;;  %v86_v30 = vld [vmem:[%s1226_s1 + $0x1f8] sm:$0xff]  ;;  %v147_v31 = vcombine.high %v139_v23, %v139_v23  ;;  %v146_v32 = vrot.slane %v132_v24, %v1014_v10  ;;  %v754_v34 = vpack.c.bf16 %v68_v26, %v67_v22  ;;  %v37_v36 = vld [vmem:[%s1226_s1 + $0x70] sm:$0xff]  ;;  %v103_v42 = vld [vmem:[%s1226_s1 + $0x280] sm:$0xff] }
  0x16   :  { %717 = vmatprep.subr.bf16.mxu0 %v716_v6  ;;  %v38_v37 = vld [vmem:[%s1226_s1 + $0x78] sm:$0xff]  ;;  %v69_v38 = vld [vmem:[%s1226_s1 + $0x170] sm:$0xff]  ;;  %v756_v40 = vpack.c.bf16 %v86_v30, %v85_v29  ;;  %v104_v43 = vld [vmem:[%s1226_s1 + $0x288] sm:$0xff] }
  0x17   :  { %747 = vmatpush3.bf16.msra.mxu1 %v746_v5  ;;  %v148_v39 = vcombine.high %v146_v32, %v146_v32  ;;  %238 = vmatprep.mubr.f32.mxu0 %v147_v31  ;;  %v70_v41 = vld [vmem:[%s1226_s1 + $0x178] sm:$0xff]  ;;  %v726_v44 = vpack.c.bf16 %v38_v37, %v37_v36  ;;  %v760_v46 = vpack.c.bf16 %v104_v43, %v103_v42  ;;  %v87_v47 = vld [vmem:[%s1226_s1 + $0x200] sm:$0xff]  ;;  %v88_v48 = vld [vmem:[%s1226_s1 + $0x208] sm:$0xff] }
  0x18   :  { %749 = vmatprep.subr.bf16.mxu1 %v748_v11  ;;  %v758_v45 = vpack.c.bf16 %v70_v41, %v69_v38  ;;  %v105_v49 = vld [vmem:[%s1226_s1 + $0x290] sm:$0xff]  ;;  %v106_v50 = vld [vmem:[%s1226_s1 + $0x298] sm:$0xff]  ;;  %v762_v52 = vpack.c.bf16 %v88_v48, %v87_v47  ;;  %v119_v54 = vld [vmem:[%s1226_s1 + $0x300] sm:$0xff] }
  0x19   :  { %719 = vmatpush3.bf16.msra.mxu0 %v718_v16  ;;  %308 = vmatprep.mubr.f32.mxu1 %v148_v39  ;;  %v89_v51 = vld [vmem:[%s1226_s1 + $0x210] sm:$0xff]  ;;  %v90_v53 = vld [vmem:[%s1226_s1 + $0x218] sm:$0xff]  ;;  %v120_v55 = vld [vmem:[%s1226_s1 + $0x308] sm:$0xff]  ;;  %v764_v56 = vpack.c.bf16 %v106_v50, %v105_v49 }
  0x1a   :  { %721 = vmatprep.subr.bf16.mxu0 %v720_v19  ;;  %v107_v57 = vld [vmem:[%s1226_s1 + $0x2a0] sm:$0xff]  ;;  %v108_v58 = vld [vmem:[%s1226_s1 + $0x2a8] sm:$0xff]  ;;  %v793_v59 = vpack.c.bf16 %v120_v55, %v119_v54  ;;  %v121_v63 = vld [vmem:[%s1226_s1 + $0x310] sm:$0xff] }
  0x1b   :  { %751 = vmatpush3.bf16.msra.mxu1 %v750_v17  ;;  %v22_v60 = vld [vmem:[%s1225_s0 + $0x8] sm:$0x3f]  ;;  %v122_v0 = vld [vmem:[%s1226_s1 + $0x318] sm:$0xff] }
  0x1c   :  { %753 = vmatprep.subr.bf16.mxu1 %v752_v25  ;;  %v1110_v62 = vrot.slane %v22_v60, %v1014_v10 }
  0x1d   :  { %723 = vmatpush3.bf16.msra.mxu0 %v722_v33 }
  0x1e   :  { %725 = vmatprep.subr.bf16.mxu0 %v724_v35 }
  0x1f   :  { %755 = vmatpush3.bf16.msra.mxu1 %v754_v34 }
  0x20   :  { %757 = vmatprep.subr.bf16.mxu1 %v756_v40 }
  0x21   :  { %727 = vmatpush3.bf16.msra.mxu0 %v726_v44 }
  0x22   :  { %761 = vmatprep.subr.bf16.mxu0 %v760_v46 }
  0x23   :  { %759 = vmatpush3.bf16.msra.mxu1 %v758_v45 }
  0x24   :  { %792 = vmatprep.subr.bf16.mxu1 %v836_v61 }
  0x25   :  { %10 = vsyncpa [#allocation3], 0  ;;  %239 = vmatmul.mubr.f32.vlgmr.msra.gmra.mrb[0].mxu0 %v139_v23  ;;  %v766_v1 = vpack.c.bf16 %v90_v53, %v89_v51  ;;  %v149_v2 = vcombine.high %v22_v60, %v22_v60  ;;  %v164_v3 = vcombine.high %v1110_v62, %v1110_v62  ;;  %v768_v4 = vpack.c.bf16 %v108_v58, %v107_v57  ;;  %v91_v5 = vld [vmem:[%s1226_s1 + $0x220] sm:$0xff]  ;;  %v92_v6 = vld [vmem:[%s1226_s1 + $0x228] sm:$0xff] }
  0x26   :  { %763 = vmatpush3.bf16.msra.mxu0 %v762_v52  ;;  %309 = vmatmul.mubr.f32.vlgmr.msra.gmra.mrb[0].mxu1 %v146_v32  ;;  %v796_v7 = vpack.c.bf16 %v122_v0, %v121_v63  ;;  %v109_v8 = vld [vmem:[%s1226_s1 + $0x2b0] sm:$0xff]  ;;  %v110_v9 = vld [vmem:[%s1226_s1 + $0x2b8] sm:$0xff]  ;;  %vm837_vm0 = vmmov 0   ;;  %v838_v11 = vmov 0.0   ;;  %v770_v12 = vpack.c.bf16 %v92_v6, %v91_v5  ;;  %v111_v17 = vld [vmem:[%s1226_s1 + $0x2c0] sm:$0xff] }
  0x27   :  { %765 = vmatprep.subr.bf16.mxu0 %v764_v56  ;;  %794 = vmatpush3.bf16.msra.mxu1 %v793_v59  ;;  %v163_v13 = vrot.slane %v149_v2, %v1014_v10  ;;  %v772_v14 = vpack.c.bf16 %v110_v9, %v109_v8  ;;  %v93_v15 = vld [vmem:[%s1226_s1 + $0x230] sm:$0xff]  ;;  %v94_v16 = vld [vmem:[%s1226_s1 + $0x238] sm:$0xff]  ;;  %vm171_vm1 = vcmask 261120   ;;  %v112_v10 = vld [vmem:[%s1226_s1 + $0x2c8] sm:$0xff]  ;;  %vm539_vm2 = vcmask 74752  }
  0x28   :  { %378 = vmatprep.mubr.f32.mxu0 %v164_v3  ;;  %795 = vmatprep.subr.bf16.mxu1 %v836_v61  ;;  %v774_v18 = vpack.c.bf16 %v94_v16, %v93_v15  ;;  %v776_v19 = vpack.c.bf16 %v112_v10, %v111_v17  ;;  %v95_v20 = vld [vmem:[%s1226_s1 + $0x240] sm:$0xff]  ;;  %v96_v21 = vld [vmem:[%s1226_s1 + $0x248] sm:$0xff]  ;;  %v113_v22 = vld [vmem:[%s1226_s1 + $0x2d0] sm:$0xff] }
  0x29   :  { %682 = vmatprep.mubr.msk.f32.mxu1 %vm837_vm0, %v838_v11  ;;  %v114_v23 = vld [vmem:[%s1226_s1 + $0x2d8] sm:$0xff]  ;;  %v778_v24 = vpack.c.bf16 %v96_v21, %v95_v20  ;;  %v97_v26 = vld [vmem:[%s1226_s1 + $0x250] sm:$0xff]  ;;  %v115_v28 = vld [vmem:[%s1226_s1 + $0x2e0] sm:$0xff] }
  0x2a   :  { %767 = vmatpush3.bf16.msra.mxu0 %v766_v1  ;;  %v780_v25 = vpack.c.bf16 %v114_v23, %v113_v22  ;;  %v98_v27 = vld [vmem:[%s1226_s1 + $0x258] sm:$0xff]  ;;  %v116_v29 = vld [vmem:[%s1226_s1 + $0x2e8] sm:$0xff]  ;;  %v99_v32 = vld [vmem:[%s1226_s1 + $0x260] sm:$0xff] }
  0x2b   :  { %769 = vmatprep.subr.bf16.mxu0 %v768_v4  ;;  %797 = vmatpush3.bf16.msra.mxu1 %v796_v7  ;;  %v782_v30 = vpack.c.bf16 %v98_v27, %v97_v26  ;;  %v784_v31 = vpack.c.bf16 %v116_v29, %v115_v28  ;;  %v100_v33 = vld [vmem:[%s1226_s1 + $0x268] sm:$0xff]  ;;  %v117_v34 = vld [vmem:[%s1226_s1 + $0x2f0] sm:$0xff]  ;;  %v118_v35 = vld [vmem:[%s1226_s1 + $0x2f8] sm:$0xff] }
  0x2c   :  { %798 = vmatprep.subr.bf16.mxu1 %v836_v61  ;;  %v786_v36 = vpack.c.bf16 %v100_v33, %v99_v32  ;;  %v788_v37 = vpack.c.bf16 %v118_v35, %v117_v34  ;;  %v101_v38 = vld [vmem:[%s1226_s1 + $0x270] sm:$0xff]  ;;  %v102_v39 = vld [vmem:[%s1226_s1 + $0x278] sm:$0xff]  ;;  %v455_v41 = vld [vmem:[%s1228_s3] sm:$0xff] }
  0x2d   :  { %v790_v40 = vpack.c.bf16 %v102_v39, %v101_v38  ;;  %v456_v42 = vld [vmem:[%s1228_s3 + $0x8] sm:$0xff]  ;;  %v457_v44 = vld [vmem:[%s1228_s3 + $0x10] sm:$0xff]  ;;  %v458_v45 = vld [vmem:[%s1228_s3 + $0x18] sm:$0xff] }
  0x2e   :  { %771 = vmatpush3.bf16.msra.mxu0 %v770_v12  ;;  %683 = vmatmul.mubr.msk.f32.vlgmr.msra.gmra.mrb[2].mxu1 %vm171_vm1, %v163_v13  ;;  %v799_v43 = vpack.c.bf16 %v456_v42, %v455_v41  ;;  %v802_v46 = vpack.c.bf16 %v458_v45, %v457_v44  ;;  %v555_v48 = vld [vmem:[%s1227_s2] ss:$0 sm:$0xff]  ;;  %s839_s2 = smov [#allocation2]  }
  0x2f   :  { %773 = vmatprep.subr.bf16.mxu0 %v772_v14  ;;  %693 = vmatprep.mubr.msk.f32.mxu1 %vm837_vm0, %v838_v11  ;;  %v557_v0 = vld [vmem:[%s1229_s4] ss:$0 sm:$0xff]  ;;  %s547_s29 = sshll.u32 %s839_s2, 4  ;;  %s548_s29 = int_to_ptr.vmem [resolvable:$true] %s547_s29 }
  0x30   :  { %800 = vmatpush3.bf16.msra.mxu1 %v799_v43  ;;  %s811_s30 = scalar_lea.vmem %s548_s29, 32  ;;  %p816_p1 = scmp.lt.s32.totalorder %s548_s29, %s548_s29 }
  0x31   :  { %801 = vmatprep.subr.bf16.mxu1 %v836_v61  ;;  %p812_p0 = scmp.ne.s32.totalorder %s548_s29, %s811_s30  ;;  %p817_p2 = scmp.lt.s32.totalorder %s811_s30, %s811_s30 }
  0x32   :  { %775 = vmatpush3.bf16.msra.mxu0 %v774_v18 }
  0x33   :  { %777 = vmatprep.subr.bf16.mxu0 %v776_v19  ;;  %p818_p3 = por %p817_p2, %p816_p1 }
  0x34   :  { %803 = vmatpush3.bf16.msra.mxu1 %v802_v46 }
  0x35   :  { %p819_p4 = pnand %p818_p3, %p812_p0 }
  0x36   :  { %779 = vmatpush3.bf16.msra.mxu0 %v778_v24 }
  0x37   :  { %781 = vmatprep.subr.bf16.mxu0 %v780_v25 }
  0x3a   :  { %783 = vmatpush3.bf16.msra.mxu0 %v782_v30 }
  0x3b   :  { %785 = vmatprep.subr.bf16.mxu0 %v784_v31 }
  0x3e   :  { %787 = vmatpush3.bf16.msra.mxu0 %v786_v36 }
  0x3f   :  { %789 = vmatprep.subr.bf16.mxu0 %v788_v37 }
  0x42   :  { %791 = vmatpush3.bf16.msra.mxu0 %v790_v40 }
  0x45   :  { %379 = vmatmul.mubr.f32.vlgmr.msra.gmra.mrb[2].mxu0 %v1110_v62 }
  0xf8   :  { %v591_v47 = vpop.f32.mrb[0].mxu0 }
  0xf9   :  { %v592_v49 = vpop.f32.mrb[1].mxu0  ;;  %v626_v50 = vpop.f32.mrb[0].mxu1 }
  0xfa   :  { %v593_v51 = vadd.f32 %v592_v49, %v591_v47  ;;  %v627_v52 = vpop.f32.mrb[1].mxu1 }
  0xfb   :  { %v628_v53 = vadd.f32 %v627_v52, %v626_v50 }
  0xfc   :  { %v241_v54 = vadd.f32 %v593_v51, %v555_v48 }
  0xfe   :  { %v311_v55 = vadd.f32 %v628_v53, %v241_v54 }
 0x101   :  { %v450_v56 = vpop.f32.mrb[2].mxu1 }
 0x102   :  { %v684_v57 = vpop.f32.mrb[3].mxu1 }
 0x118   :  { %v661_v58 = vpop.f32.mrb[2].mxu0 }
 0x119   :  { %v662_v59 = vpop.f32.mrb[3].mxu0 }
 0x11a   :  { %v663_v60 = vadd.f32 %v662_v59, %v661_v58 }
 0x11c   :  { %v381_v61 = vadd.f32 %v663_v60, %v311_v55 }
 0x11e   :  { %v451_v62 = vadd.f32 %v450_v56, %v381_v61 }
 0x120   :  { %v454_v63 = vmax.f32 %v451_v62, 0.0 }
 0x122   :  { %694 = vmatmul.mubr.msk.f32.vlgmr.msra.gmra.mrb[4].mxu1 %vm171_vm1, %v454_v63 }
 0x1f5   :  { %v535_v1 = vpop.f32.mrb[4].mxu1 }
 0x1f6   :  { %v536_v2 = vadd.f32 %v557_v0, %v535_v1  ;;  %v695_v3 = vpop.f32.mrb[5].mxu1 }
 0x1f8   :  { %540 = vst.msk [vmem:[#allocation2] sm:$0x3] %vm539_vm2, %v536_v2 }
 0x1f9   :  { %822 = shalt.err (!%p819_p4)
}
 0x1fa   :  { %s823_s8 = scalar_lea.hbm %s1230_s5, 32 }
 0x1fb   :  { %p824_p5 = scmp.ne.s32.totalorder %s1230_s5, %s823_s8  ;;  %p827_p6 = scmp.lt.u32.totalorder %s823_s8, %s1230_s5 }
 0x1fd   :  { %p829_p7 = pnand %p827_p6, %p824_p5 }
 0x1ff   :  { %832 = shalt.err (!%p829_p7)
}
 0x200   :  { %550 = dma.vmem_to_hbm [thread:$0]  %s548_s29, 32, %s1230_s5, [#allocation3]  }
 0x201   :  { %833 = dma.done.wait [#allocation3], 32  }
 0x202   :  { %834 = vsyncadd [#allocation3], 4294967264 }
 0x203   :  { %554 = vsyncpa [#allocation3], 1 }

</bundles_post_ra>
